<compile_context>
chip_gen: v5e
topology: v5e:2x2
jax: 0.10.0
libtpu: 0.0.40
codegen_flags: <defaults>
</compile_context>

<pallas_src>
import math

import jax
import jax.numpy as jnp
from jax import lax
from jax.experimental import pallas as pl
from jax.experimental.pallas import tpu as pltpu


def _lstm_model_kernel(x_ref,      # (T, Bt)        f32  input scalar sequence (time-major)
                       len_ref,    # (Bt, 1)        i32  valid lengths
                       wl0_ref,    # (1, 4H)        f32  folded ff->layer0 input weights
                       ball_ref,   # (L, 1, 4H)     f32  combined biases per layer
                       wih_ref,    # (L, H, 4H)     f/bf input-hidden weights (transposed); [0] unused
                       whh_ref,    # (L, H, 4H)     f/bf hidden-hidden weights (transposed)
                       wout_ref,   # (3H, C)        f32  output weights (transposed)
                       bout_ref,   # (1, C)         f32
                       out_ref,    # (Bt, C)        f32
                       gates_ref,  # scratch (T, Bt, 4H) f32  precomputed input gates
                       seq_ref):   # scratch (T, Bt, H)  f32  previous layer's outputs
    T, B = x_ref.shape
    L = whh_ref.shape[0]
    H = whh_ref.shape[1]
    cdt = whh_ref.dtype                            # matmul operand dtype (f32 or bf16)

    lens_i = len_ref[...]                          # (B, 1) int32

    # ---- layer 0 input projection with ff folded in (rank-1 broadcast) ------
    x = x_ref[...]                                 # (T, B)
    gates_ref[...] = x[:, :, None] * wl0_ref[...] + ball_ref[0]        # (T, B, 4H)

    def run_layer(l, is_last_layer):
        w_hh = whh_ref[l]                          # (H, 4H)

        if l > 0:
            # Hoisted input projection: one big MXU matmul off the serial path.
            # (T,B,H) -> (T*B,H) is layout-free here (B is a multiple of 8).
            seq_flat = seq_ref[...].reshape(T * B, H).astype(cdt)
            g = jnp.dot(seq_flat, wih_ref[l], preferred_element_type=jnp.float32)
            gates_ref[...] = (g + ball_ref[l]).reshape(T, B, 4 * H)

        def gate_math(t, h, c):
            gates = gates_ref[t] + jnp.dot(h.astype(cdt), w_hh,
                                           preferred_element_type=jnp.float32)  # (B, 4H)
            sg = jax.nn.sigmoid(gates)             # one full-width EUP pass
            th = jnp.tanh(gates)                   # one full-width EUP pass
            i_g = sg[:, 0 * H:1 * H]
            f_g = sg[:, 1 * H:2 * H]
            o_g = sg[:, 3 * H:4 * H]
            g_g = th[:, 2 * H:3 * H]
            c = f_g * c + i_g * g_g
            h = o_g * jnp.tanh(c)
            return h, c

        zeros = jnp.zeros((B, H), jnp.float32)

        if not is_last_layer:
            def step(t, carry):
                h, c = carry
                h, c = gate_math(t, h, c)
                seq_ref[t] = h                     # next layer's input
                return h, c

            lax.fori_loop(0, T, step, (zeros, zeros), unroll=True)
            return None

        # last layer: fuse mean/max/last pooling into the recurrence
        neg_inf = jnp.full((B, H), -jnp.inf, jnp.float32)

        def step(t, carry):
            h, c, s_acc, m_acc, l_acc = carry
            h, c = gate_math(t, h, c)
            valid = t < lens_i                     # (B, 1) bool
            is_last_t = t == (lens_i - 1)          # (B, 1) bool
            s_acc = s_acc + jnp.where(valid, h, 0.0)
            m_acc = jnp.where(valid, jnp.maximum(m_acc, h), m_acc)
            l_acc = jnp.where(is_last_t, h, l_acc)
            return h, c, s_acc, m_acc, l_acc

        carry = lax.fori_loop(0, T, step,
                              (zeros, zeros, zeros, neg_inf, zeros),
                              unroll=True)
        return carry[2], carry[3], carry[4]

    for l in range(L - 1):
        run_layer(l, False)
    sum_h, max_h, last_h = run_layer(L - 1, True)

    lens_f = jnp.maximum(lens_i, 1).astype(jnp.float32)                # guard length==0
    mean_h = sum_h / lens_f                                            # (B, H)

    # final Linear(3H -> C) as three row-block matmuls (== concat @ W)
    w = wout_ref[...]                              # (3H, C)
    out = (jnp.dot(mean_h, w[0 * H:1 * H], preferred_element_type=jnp.float32)
           + jnp.dot(max_h, w[1 * H:2 * H], preferred_element_type=jnp.float32)
           + jnp.dot(last_h, w[2 * H:3 * H], preferred_element_type=jnp.float32)
           + bout_ref[...])
    out_ref[...] = out


def lstm_model_forward(x, lengths, params, *, compute_dtype=jnp.float32):
    """x: (B, T, 1) f32, lengths: (B,) int32, returns (B, C).

    compute_dtype controls the MXU operand dtype of the LSTM matmuls
    (use jnp.bfloat16 on v6e/v7x; keep f32 on v5e / for tight tolerances).
    Accumulation is always f32.
    """
    B, T, _ = x.shape
    H = params["w_ff"].shape[0]
    C = params["w_out"].shape[0]
    L = params["w_ih"].shape[0]

    # ---- batch padding / tiling (>= 8 sublanes; 128-wide tiles when large) --
    if B <= 128:
        B_pad = max(8, ((B + 7) // 8) * 8)
        B_tile = B_pad
    else:
        B_tile = 128
        B_pad = ((B + B_tile - 1) // B_tile) * B_tile
    pad = B_pad - B

    x_tb = jnp.transpose(x[..., 0], (1, 0)).astype(jnp.float32)        # (T, B)
    if pad:
        x_tb = jnp.pad(x_tb, ((0, 0), (0, pad)))
    lens = lengths.astype(jnp.int32)
    if pad:
        lens = jnp.concatenate([lens, jnp.ones((pad,), jnp.int32)])
    lens = jnp.maximum(lens, 1).reshape(B_pad, 1)                      # (B_pad, 1)

    # ---- weight prep (transposed so every matmul is (rows,K) @ (K,cols)) ----
    w_ih_t = jnp.transpose(params["w_ih"], (0, 2, 1)).astype(jnp.float32)   # (L, H, 4H)
    w_hh_t = jnp.transpose(params["w_hh"], (0, 2, 1)).astype(jnp.float32)   # (L, H, 4H)

    # fold ff Linear(1->H) into layer 0's input projection
    w_ff_row = params["w_ff"].reshape(1, H).astype(jnp.float32)
    b_ff_row = params["b_ff"].reshape(1, H).astype(jnp.float32)
    w_l0 = w_ff_row @ w_ih_t[0]                                        # (1, 4H)
    b_all = (params["b_ih"] + params["b_hh"]).astype(jnp.float32)[:, None, :]  # (L, 1, 4H)
    b_all = b_all.at[0].add(b_ff_row @ w_ih_t[0])

    w_out_t = jnp.transpose(params["w_out"], (1, 0)).astype(jnp.float32)    # (3H, C)
    b_out = params["b_out"].reshape(1, C).astype(jnp.float32)

    w_ih_t = w_ih_t.astype(compute_dtype)
    w_hh_t = w_hh_t.astype(compute_dtype)

    # ---- VMEM budget (scratch + double-buffered tiles + resident weights) ---
    est = 4 * (T * B_tile * 5 * H                    # gates + seq scratch
               + 2 * (T * B_tile + B_tile)           # x + lens (double-buffered)
               + 2 * L * H * 4 * H                   # w_ih + w_hh
               + L * 4 * H + 4 * H + 3 * H * C + C   # biases / w_l0 / w_out / b_out
               + 2 * B_tile * C)                     # out
    vmem_limit = int(min(max(2 * est, 16 * 1024 * 1024), 48 * 1024 * 1024))

    def full_spec(shape):
        n = len(shape)
        return pl.BlockSpec(shape, lambda i, n=n: (0,) * n)

    grid_spec = pltpu.PrefetchScalarGridSpec(
        num_scalar_prefetch=0,
        grid=(B_pad // B_tile,),
        in_specs=[
            pl.BlockSpec((T, B_tile), lambda i: (0, i)),   # x (time-major)
            pl.BlockSpec((B_tile, 1), lambda i: (i, 0)),   # lengths
            full_spec((1, 4 * H)),                         # folded layer-0 weights
            full_spec((L, 1, 4 * H)),                      # combined biases
            full_spec((L, H, 4 * H)),                      # w_ih (transposed)
            full_spec((L, H, 4 * H)),                      # w_hh (transposed)
            full_spec((3 * H, C)),                         # w_out (transposed)
            full_spec((1, C)),                             # b_out
        ],
        out_specs=pl.BlockSpec((B_tile, C), lambda i: (i, 0)),
        scratch_shapes=[
            pltpu.VMEM((T, B_tile, 4 * H), jnp.float32),   # precomputed input gates
            pltpu.VMEM((T, B_tile, H), jnp.float32),       # current layer output sequence
        ],
    )

    out = pl.pallas_call(
        _lstm_model_kernel,
        out_shape=jax.ShapeDtypeStruct((B_pad, C), jnp.float32),
        grid_spec=grid_spec,
        compiler_params=pltpu.CompilerParams(
            dimension_semantics=("parallel",),
            vmem_limit_bytes=vmem_limit),
    )(x_tb, lens, w_l0, b_all, w_ih_t, w_hh_t, w_out_t, b_out)

    return out[:B]


def init_params(key, H, L, C):
    """Deterministic parameter init mirroring the PyTorch module's shapes."""
    keys = jax.random.split(key, 6 + 4 * L)

    def u(k, shape, bound):
        return jax.random.uniform(k, shape, jnp.float32, -bound, bound)

    w_ff = u(keys[0], (H, 1), 1.0)          # Linear(1, H): bound = 1/sqrt(1)
    b_ff = u(keys[1], (H,), 1.0)

    k = 1.0 / math.sqrt(H)
    w_ih, w_hh, b_ih, b_hh = [], [], [], []
    for l in range(L):
        base = 2 + 4 * l
        w_ih.append(u(keys[base + 0], (4 * H, H), k))
        w_hh.append(u(keys[base + 1], (4 * H, H), k))
        b_ih.append(u(keys[base + 2], (4 * H,), k))
        b_hh.append(u(keys[base + 3], (4 * H,), k))
    w_ih = jnp.stack(w_ih)
    w_hh = jnp.stack(w_hh)
    b_ih = jnp.stack(b_ih)
    b_hh = jnp.stack(b_hh)

    # Replicate the explicit bias surgery from Model.__init__:
    # indices = [1 + i*4 for i in range(H)] set to 1.0 on bias_ih/bias_hh.
    idx = 1 + 4 * jnp.arange(H)
    layers_patched = [0]
    if L in (2, 3):
        layers_patched.append(1)
    if L == 3:
        layers_patched.append(2)
    for l in layers_patched:
        b_ih = b_ih.at[l, idx].set(1.0)
        b_hh = b_hh.at[l, idx].set(1.0)

    ko = 1.0 / math.sqrt(3 * H)
    w_out = u(keys[2 + 4 * L], (C, 3 * H), ko)
    b_out = u(keys[3 + 4 * L], (C,), ko)

    return dict(w_ff=w_ff, b_ff=b_ff, w_ih=w_ih, w_hh=w_hh,
                b_ih=b_ih, b_hh=b_hh, w_out=w_out, b_out=b_out)


def reference_forward(x, lengths, params):
    """Pure-JAX reference matching the PyTorch forward (eval mode)."""
    B, T, _ = x.shape
    H = params["w_ff"].shape[0]
    L = params["w_ih"].shape[0]

    seq = x @ params["w_ff"].T + params["b_ff"]                        # (B, T, H)
    for l in range(L):
        w_ih = params["w_ih"][l]
        w_hh = params["w_hh"][l]
        b = params["b_ih"][l] + params["b_hh"][l]

        def step(carry, x_t, w_ih=w_ih, w_hh=w_hh, b=b):
            h, c = carry
            gates = x_t @ w_ih.T + h @ w_hh.T + b
            i, f, g, o = jnp.split(gates, 4, axis=-1)
            i = jax.nn.sigmoid(i)
            f = jax.nn.sigmoid(f)
            g = jnp.tanh(g)
            o = jax.nn.sigmoid(o)
            c = f * c + i * g
            h = o * jnp.tanh(c)
            return (h, c), h

        init = (jnp.zeros((B, H), jnp.float32), jnp.zeros((B, H), jnp.float32))
        _, ys = lax.scan(step, init, jnp.transpose(seq, (1, 0, 2)))
        seq = jnp.transpose(ys, (1, 0, 2))                             # (B, T, H)

    t_idx = jnp.arange(T)[None, :, None]
    lens = lengths[:, None, None]
    valid = t_idx < lens
    mean_h = jnp.sum(jnp.where(valid, seq, 0.0), axis=1) / lengths[:, None].astype(jnp.float32)
    max_h = jnp.max(jnp.where(valid, seq, -jnp.inf), axis=1)
    last_h = jnp.take_along_axis(seq, (lengths - 1)[:, None, None], axis=1)[:, 0, :]
    h_cat = jnp.concatenate([mean_h, max_h, last_h], axis=-1)
    return h_cat @ params["w_out"].T + params["b_out"]


if __name__ == "__main__":
    H, L, C = 32, 2, 5          # hidden_size, rnn_layers, class_count
    B, T = 4, 8                 # batch, max sequence length

    key = jax.random.PRNGKey(0)
    pkey, xkey = jax.random.split(key)
    params = init_params(pkey, H, L, C)

    x = jax.random.normal(xkey, (B, T, 1), jnp.float32)
    lengths = jnp.array([8, 6, 5, 3], jnp.int32)   # sorted descending (pack_padded_sequence)

    out = lstm_model_forward(x, lengths, params)   # f32 matmuls (bf16 optional on v6e/v7x)
    out = jax.block_until_ready(out)

    ref = reference_forward(x, lengths, params)
    assert out.shape == (B, C)
    assert bool(jnp.all(jnp.isfinite(out)))
    assert bool(jnp.allclose(out, ref, atol=1e-3, rtol=1e-3)), (
        f"mismatch: max abs diff = {float(jnp.max(jnp.abs(out - ref)))}")

    print("KERNEL_OK")
</pallas_src>

<mosaic_0001>
module attributes {stable_mosaic.version = 11 : i64} {
  func.func @_lstm_model_kernel(%arg0: i32, %arg1: memref<8x8xf32, #tpu.memory_space<vmem>>, %arg2: memref<8x1xi32, #tpu.memory_space<vmem>>, %arg3: memref<1x128xf32, #tpu.memory_space<vmem>>, %arg4: memref<2x1x128xf32, #tpu.memory_space<vmem>>, %arg5: memref<2x32x128xf32, #tpu.memory_space<vmem>>, %arg6: memref<2x32x128xf32, #tpu.memory_space<vmem>>, %arg7: memref<96x5xf32, #tpu.memory_space<vmem>>, %arg8: memref<1x5xf32, #tpu.memory_space<vmem>>, %arg9: memref<8x5xf32, #tpu.memory_space<vmem>>, %arg10: memref<8x8x128xf32, #tpu.memory_space<vmem>>, %arg11: memref<8x8x32xf32, #tpu.memory_space<vmem>>) attributes {dimension_semantics = [#tpu.dimension_semantics<parallel>], iteration_bounds = array<i64: 1>, scalar_prefetch = 0 : i64, scratch_operands = 2 : i64, tpu.core_type = #tpu.core_type<tc>, window_params = [{transform_indices = @transform_0, window_bounds = array<i64: 8, 8>}, {transform_indices = @transform_1, window_bounds = array<i64: 8, 1>}, {pipeline_mode = #tpu.pipeline_mode<synchronous>, transform_indices = @transform_2, window_bounds = array<i64: 1, 128>}, {pipeline_mode = #tpu.pipeline_mode<synchronous>, transform_indices = @transform_3, window_bounds = array<i64: 2, 1, 128>}, {pipeline_mode = #tpu.pipeline_mode<synchronous>, transform_indices = @transform_4, window_bounds = array<i64: 2, 32, 128>}, {pipeline_mode = #tpu.pipeline_mode<synchronous>, transform_indices = @transform_5, window_bounds = array<i64: 2, 32, 128>}, {pipeline_mode = #tpu.pipeline_mode<synchronous>, transform_indices = @transform_6, window_bounds = array<i64: 96, 5>}, {pipeline_mode = #tpu.pipeline_mode<synchronous>, transform_indices = @transform_7, window_bounds = array<i64: 1, 5>}, {transform_indices = @transform_8, window_bounds = array<i64: 8, 5>}]} {
    %c0 = arith.constant 0 : index
    %c0_0 = arith.constant 0 : index
    %0 = vector.load %arg2[%c0, %c0_0] : memref<8x1xi32, #tpu.memory_space<vmem>>, vector<8x1xi32>
    %c0_1 = arith.constant 0 : index
    %c0_2 = arith.constant 0 : index
    %1 = vector.load %arg1[%c0_1, %c0_2] : memref<8x8xf32, #tpu.memory_space<vmem>>, vector<8x8xf32>
    %2 = vector.shape_cast %1 : vector<8x8xf32> to vector<8x8x1xf32>
    %c0_3 = arith.constant 0 : index
    %c0_4 = arith.constant 0 : index
    %3 = vector.load %arg3[%c0_3, %c0_4] : memref<1x128xf32, #tpu.memory_space<vmem>>, vector<1x128xf32>
    %4 = vector.shape_cast %3 : vector<1x128xf32> to vector<1x1x128xf32>
    %5 = vector.broadcast %2 : vector<8x8x1xf32> to vector<8x8x128xf32>
    %6 = vector.broadcast %4 : vector<1x1x128xf32> to vector<8x8x128xf32>
    %7 = arith.mulf %5, %6 : vector<8x8x128xf32>
    %c0_5 = arith.constant 0 : index
    %c0_6 = arith.constant 0 : index
    %c0_7 = arith.constant 0 : index
    %8 = vector.load %arg4[%c0_5, %c0_6, %c0_7] : memref<2x1x128xf32, #tpu.memory_space<vmem>>, vector<1x1x128xf32>
    %9 = vector.shape_cast %8 : vector<1x1x128xf32> to vector<1x128xf32>
    %10 = vector.shape_cast %9 : vector<1x128xf32> to vector<1x1x128xf32>
    %11 = vector.broadcast %10 : vector<1x1x128xf32> to vector<8x8x128xf32>
    %12 = arith.addf %7, %11 : vector<8x8x128xf32>
    %c0_8 = arith.constant 0 : index
    %c0_9 = arith.constant 0 : index
    %c0_10 = arith.constant 0 : index
    %13 = vector.load %arg10[%c0_8, %c0_9, %c0_10] : memref<8x8x128xf32, #tpu.memory_space<vmem>>, vector<8x8x128xf32>
    tpu.vector_store %arg10[%c0_8, %c0_9, %c0_10], %12 {strides = array<i32>} : memref<8x8x128xf32, #tpu.memory_space<vmem>>, vector<8x8x128xf32>,
    %c0_11 = arith.constant 0 : index
    %c0_12 = arith.constant 0 : index
    %c0_13 = arith.constant 0 : index
    %14 = vector.load %arg6[%c0_11, %c0_12, %c0_13] : memref<2x32x128xf32, #tpu.memory_space<vmem>>, vector<1x32x128xf32>
    %15 = vector.shape_cast %14 : vector<1x32x128xf32> to vector<32x128xf32>
    %cst = arith.constant 0.000000e+00 : f32
    %16 = vector.broadcast %cst : f32 to vector<8x32xf32>
    %c0_i32 = arith.constant 0 : i32
    %17 = arith.index_cast %c0_i32 : i32 to index
    %c0_14 = arith.constant 0 : index
    %c0_15 = arith.constant 0 : index
    %18 = vector.load %arg10[%17, %c0_14, %c0_15] : memref<8x8x128xf32, #tpu.memory_space<vmem>>, vector<1x8x128xf32>
    %19 = vector.shape_cast %18 : vector<1x8x128xf32> to vector<8x128xf32>
    %cst_16 = arith.constant dense<0.000000e+00> : vector<8x128xf32>
    %20 = tpu.matmul %16, %15, %cst_16 {dimension_numbers = #tpu.dot_dimension_numbers<[1], [0], [0], [1], [0, 0, 1, 1], [], []>} : vector<8x32xf32>, vector<32x128xf32>, vector<8x128xf32> -> vector<8x128xf32>
    %21 = arith.addf %19, %20 : vector<8x128xf32>
    %22 = arith.negf %21 : vector<8x128xf32>
    %23 = math.exp %22 : vector<8x128xf32>
    %cst_17 = arith.constant 1.000000e+00 : f32
    %24 = vector.broadcast %cst_17 : f32 to vector<8x128xf32>
    %25 = arith.addf %24, %23 : vector<8x128xf32>
    %26 = arith.divf %24, %25 : vector<8x128xf32>
    %27 = math.tanh %21 : vector<8x128xf32>
    %28 = vector.extract_strided_slice %26 {offsets = [0, 0], sizes = [8, 32], strides = [1, 1]} : vector<8x128xf32> to vector<8x32xf32>
    %29 = vector.extract_strided_slice %26 {offsets = [0, 32], sizes = [8, 32], strides = [1, 1]} : vector<8x128xf32> to vector<8x32xf32>
    %30 = vector.extract_strided_slice %26 {offsets = [0, 96], sizes = [8, 32], strides = [1, 1]} : vector<8x128xf32> to vector<8x32xf32>
    %31 = vector.extract_strided_slice %27 {offsets = [0, 64], sizes = [8, 32], strides = [1, 1]} : vector<8x128xf32> to vector<8x32xf32>
    %32 = arith.mulf %29, %16 : vector<8x32xf32>
    %33 = arith.mulf %28, %31 : vector<8x32xf32>
    %34 = arith.addf %32, %33 : vector<8x32xf32>
    %35 = math.tanh %34 : vector<8x32xf32>
    %36 = arith.mulf %30, %35 : vector<8x32xf32>
    %37 = arith.index_cast %c0_i32 : i32 to index
    %c0_18 = arith.constant 0 : index
    %c0_19 = arith.constant 0 : index
    %38 = vector.load %arg11[%37, %c0_18, %c0_19] : memref<8x8x32xf32, #tpu.memory_space<vmem>>, vector<1x8x32xf32>
    %39 = vector.shape_cast %38 : vector<1x8x32xf32> to vector<8x32xf32>
    %40 = vector.shape_cast %36 : vector<8x32xf32> to vector<1x8x32xf32>
    tpu.vector_store %arg11[%37, %c0_18, %c0_19], %40 {strides = array<i32>} : memref<8x8x32xf32, #tpu.memory_space<vmem>>, vector<1x8x32xf32>,
    %c1_i32 = arith.constant 1 : i32
    %41 = arith.index_cast %c1_i32 : i32 to index
    %c0_20 = arith.constant 0 : index
    %c0_21 = arith.constant 0 : index
    %42 = vector.load %arg10[%41, %c0_20, %c0_21] : memref<8x8x128xf32, #tpu.memory_space<vmem>>, vector<1x8x128xf32>
    %43 = vector.shape_cast %42 : vector<1x8x128xf32> to vector<8x128xf32>
    %cst_22 = arith.constant dense<0.000000e+00> : vector<8x128xf32>
    %44 = tpu.matmul %36, %15, %cst_22 {dimension_numbers = #tpu.dot_dimension_numbers<[1], [0], [0], [1], [0, 0, 1, 1], [], []>} : vector<8x32xf32>, vector<32x128xf32>, vector<8x128xf32> -> vector<8x128xf32>
    %45 = arith.addf %43, %44 : vector<8x128xf32>
    %46 = arith.negf %45 : vector<8x128xf32>
    %47 = math.exp %46 : vector<8x128xf32>
    %cst_23 = arith.constant 1.000000e+00 : f32
    %48 = vector.broadcast %cst_23 : f32 to vector<8x128xf32>
    %49 = arith.addf %48, %47 : vector<8x128xf32>
    %50 = arith.divf %48, %49 : vector<8x128xf32>
    %51 = math.tanh %45 : vector<8x128xf32>
    %52 = vector.extract_strided_slice %50 {offsets = [0, 0], sizes = [8, 32], strides = [1, 1]} : vector<8x128xf32> to vector<8x32xf32>
    %53 = vector.extract_strided_slice %50 {offsets = [0, 32], sizes = [8, 32], strides = [1, 1]} : vector<8x128xf32> to vector<8x32xf32>
    %54 = vector.extract_strided_slice %50 {offsets = [0, 96], sizes = [8, 32], strides = [1, 1]} : vector<8x128xf32> to vector<8x32xf32>
    %55 = vector.extract_strided_slice %51 {offsets = [0, 64], sizes = [8, 32], strides = [1, 1]} : vector<8x128xf32> to vector<8x32xf32>
    %56 = arith.mulf %53, %34 : vector<8x32xf32>
    %57 = arith.mulf %52, %55 : vector<8x32xf32>
    %58 = arith.addf %56, %57 : vector<8x32xf32>
    %59 = math.tanh %58 : vector<8x32xf32>
    %60 = arith.mulf %54, %59 : vector<8x32xf32>
    %61 = arith.index_cast %c1_i32 : i32 to index
    %c0_24 = arith.constant 0 : index
    %c0_25 = arith.constant 0 : index
    %62 = vector.load %arg11[%61, %c0_24, %c0_25] : memref<8x8x32xf32, #tpu.memory_space<vmem>>, vector<1x8x32xf32>
    %63 = vector.shape_cast %62 : vector<1x8x32xf32> to vector<8x32xf32>
    %64 = vector.shape_cast %60 : vector<8x32xf32> to vector<1x8x32xf32>
    tpu.vector_store %arg11[%61, %c0_24, %c0_25], %64 {strides = array<i32>} : memref<8x8x32xf32, #tpu.memory_space<vmem>>, vector<1x8x32xf32>,
    %c2_i32 = arith.constant 2 : i32
    %65 = arith.index_cast %c2_i32 : i32 to index
    %c0_26 = arith.constant 0 : index
    %c0_27 = arith.constant 0 : index
    %66 = vector.load %arg10[%65, %c0_26, %c0_27] : memref<8x8x128xf32, #tpu.memory_space<vmem>>, vector<1x8x128xf32>
    %67 = vector.shape_cast %66 : vector<1x8x128xf32> to vector<8x128xf32>
    %cst_28 = arith.constant dense<0.000000e+00> : vector<8x128xf32>
    %68 = tpu.matmul %60, %15, %cst_28 {dimension_numbers = #tpu.dot_dimension_numbers<[1], [0], [0], [1], [0, 0, 1, 1], [], []>} : vector<8x32xf32>, vector<32x128xf32>, vector<8x128xf32> -> vector<8x128xf32>
    %69 = arith.addf %67, %68 : vector<8x128xf32>
    %70 = arith.negf %69 : vector<8x128xf32>
    %71 = math.exp %70 : vector<8x128xf32>
    %cst_29 = arith.constant 1.000000e+00 : f32
    %72 = vector.broadcast %cst_29 : f32 to vector<8x128xf32>
    %73 = arith.addf %72, %71 : vector<8x128xf32>
    %74 = arith.divf %72, %73 : vector<8x128xf32>
    %75 = math.tanh %69 : vector<8x128xf32>
    %76 = vector.extract_strided_slice %74 {offsets = [0, 0], sizes = [8, 32], strides = [1, 1]} : vector<8x128xf32> to vector<8x32xf32>
    %77 = vector.extract_strided_slice %74 {offsets = [0, 32], sizes = [8, 32], strides = [1, 1]} : vector<8x128xf32> to vector<8x32xf32>
    %78 = vector.extract_strided_slice %74 {offsets = [0, 96], sizes = [8, 32], strides = [1, 1]} : vector<8x128xf32> to vector<8x32xf32>
    %79 = vector.extract_strided_slice %75 {offsets = [0, 64], sizes = [8, 32], strides = [1, 1]} : vector<8x128xf32> to vector<8x32xf32>
    %80 = arith.mulf %77, %58 : vector<8x32xf32>
    %81 = arith.mulf %76, %79 : vector<8x32xf32>
    %82 = arith.addf %80, %81 : vector<8x32xf32>
    %83 = math.tanh %82 : vector<8x32xf32>
    %84 = arith.mulf %78, %83 : vector<8x32xf32>
    %85 = arith.index_cast %c2_i32 : i32 to index
    %c0_30 = arith.constant 0 : index
    %c0_31 = arith.constant 0 : index
    %86 = vector.load %arg11[%85, %c0_30, %c0_31] : memref<8x8x32xf32, #tpu.memory_space<vmem>>, vector<1x8x32xf32>
    %87 = vector.shape_cast %86 : vector<1x8x32xf32> to vector<8x32xf32>
    %88 = vector.shape_cast %84 : vector<8x32xf32> to vector<1x8x32xf32>
    tpu.vector_store %arg11[%85, %c0_30, %c0_31], %88 {strides = array<i32>} : memref<8x8x32xf32, #tpu.memory_space<vmem>>, vector<1x8x32xf32>,
    %c3_i32 = arith.constant 3 : i32
    %89 = arith.index_cast %c3_i32 : i32 to index
    %c0_32 = arith.constant 0 : index
    %c0_33 = arith.constant 0 : index
    %90 = vector.load %arg10[%89, %c0_32, %c0_33] : memref<8x8x128xf32, #tpu.memory_space<vmem>>, vector<1x8x128xf32>
    %91 = vector.shape_cast %90 : vector<1x8x128xf32> to vector<8x128xf32>
    %cst_34 = arith.constant dense<0.000000e+00> : vector<8x128xf32>
    %92 = tpu.matmul %84, %15, %cst_34 {dimension_numbers = #tpu.dot_dimension_numbers<[1], [0], [0], [1], [0, 0, 1, 1], [], []>} : vector<8x32xf32>, vector<32x128xf32>, vector<8x128xf32> -> vector<8x128xf32>
    %93 = arith.addf %91, %92 : vector<8x128xf32>
    %94 = arith.negf %93 : vector<8x128xf32>
    %95 = math.exp %94 : vector<8x128xf32>
    %cst_35 = arith.constant 1.000000e+00 : f32
    %96 = vector.broadcast %cst_35 : f32 to vector<8x128xf32>
    %97 = arith.addf %96, %95 : vector<8x128xf32>
    %98 = arith.divf %96, %97 : vector<8x128xf32>
    %99 = math.tanh %93 : vector<8x128xf32>
    %100 = vector.extract_strided_slice %98 {offsets = [0, 0], sizes = [8, 32], strides = [1, 1]} : vector<8x128xf32> to vector<8x32xf32>
    %101 = vector.extract_strided_slice %98 {offsets = [0, 32], sizes = [8, 32], strides = [1, 1]} : vector<8x128xf32> to vector<8x32xf32>
    %102 = vector.extract_strided_slice %98 {offsets = [0, 96], sizes = [8, 32], strides = [1, 1]} : vector<8x128xf32> to vector<8x32xf32>
    %103 = vector.extract_strided_slice %99 {offsets = [0, 64], sizes = [8, 32], strides = [1, 1]} : vector<8x128xf32> to vector<8x32xf32>
    %104 = arith.mulf %101, %82 : vector<8x32xf32>
    %105 = arith.mulf %100, %103 : vector<8x32xf32>
    %106 = arith.addf %104, %105 : vector<8x32xf32>
    %107 = math.tanh %106 : vector<8x32xf32>
    %108 = arith.mulf %102, %107 : vector<8x32xf32>
    %109 = arith.index_cast %c3_i32 : i32 to index
    %c0_36 = arith.constant 0 : index
    %c0_37 = arith.constant 0 : index
    %110 = vector.load %arg11[%109, %c0_36, %c0_37] : memref<8x8x32xf32, #tpu.memory_space<vmem>>, vector<1x8x32xf32>
    %111 = vector.shape_cast %110 : vector<1x8x32xf32> to vector<8x32xf32>
    %112 = vector.shape_cast %108 : vector<8x32xf32> to vector<1x8x32xf32>
    tpu.vector_store %arg11[%109, %c0_36, %c0_37], %112 {strides = array<i32>} : memref<8x8x32xf32, #tpu.memory_space<vmem>>, vector<1x8x32xf32>,
    %c4_i32 = arith.constant 4 : i32
    %113 = arith.index_cast %c4_i32 : i32 to index
    %c0_38 = arith.constant 0 : index
    %c0_39 = arith.constant 0 : index
    %114 = vector.load %arg10[%113, %c0_38, %c0_39] : memref<8x8x128xf32, #tpu.memory_space<vmem>>, vector<1x8x128xf32>
    %115 = vector.shape_cast %114 : vector<1x8x128xf32> to vector<8x128xf32>
    %cst_40 = arith.constant dense<0.000000e+00> : vector<8x128xf32>
    %116 = tpu.matmul %108, %15, %cst_40 {dimension_numbers = #tpu.dot_dimension_numbers<[1], [0], [0], [1], [0, 0, 1, 1], [], []>} : vector<8x32xf32>, vector<32x128xf32>, vector<8x128xf32> -> vector<8x128xf32>
    %117 = arith.addf %115, %116 : vector<8x128xf32>
    %118 = arith.negf %117 : vector<8x128xf32>
    %119 = math.exp %118 : vector<8x128xf32>
    %cst_41 = arith.constant 1.000000e+00 : f32
    %120 = vector.broadcast %cst_41 : f32 to vector<8x128xf32>
    %121 = arith.addf %120, %119 : vector<8x128xf32>
    %122 = arith.divf %120, %121 : vector<8x128xf32>
    %123 = math.tanh %117 : vector<8x128xf32>
    %124 = vector.extract_strided_slice %122 {offsets = [0, 0], sizes = [8, 32], strides = [1, 1]} : vector<8x128xf32> to vector<8x32xf32>
    %125 = vector.extract_strided_slice %122 {offsets = [0, 32], sizes = [8, 32], strides = [1, 1]} : vector<8x128xf32> to vector<8x32xf32>
    %126 = vector.extract_strided_slice %122 {offsets = [0, 96], sizes = [8, 32], strides = [1, 1]} : vector<8x128xf32> to vector<8x32xf32>
    %127 = vector.extract_strided_slice %123 {offsets = [0, 64], sizes = [8, 32], strides = [1, 1]} : vector<8x128xf32> to vector<8x32xf32>
    %128 = arith.mulf %125, %106 : vector<8x32xf32>
    %129 = arith.mulf %124, %127 : vector<8x32xf32>
    %130 = arith.addf %128, %129 : vector<8x32xf32>
    %131 = math.tanh %130 : vector<8x32xf32>
    %132 = arith.mulf %126, %131 : vector<8x32xf32>
    %133 = arith.index_cast %c4_i32 : i32 to index
    %c0_42 = arith.constant 0 : index
    %c0_43 = arith.constant 0 : index
    %134 = vector.load %arg11[%133, %c0_42, %c0_43] : memref<8x8x32xf32, #tpu.memory_space<vmem>>, vector<1x8x32xf32>
    %135 = vector.shape_cast %134 : vector<1x8x32xf32> to vector<8x32xf32>
    %136 = vector.shape_cast %132 : vector<8x32xf32> to vector<1x8x32xf32>
    tpu.vector_store %arg11[%133, %c0_42, %c0_43], %136 {strides = array<i32>} : memref<8x8x32xf32, #tpu.memory_space<vmem>>, vector<1x8x32xf32>,
    %c5_i32 = arith.constant 5 : i32
    %137 = arith.index_cast %c5_i32 : i32 to index
    %c0_44 = arith.constant 0 : index
    %c0_45 = arith.constant 0 : index
    %138 = vector.load %arg10[%137, %c0_44, %c0_45] : memref<8x8x128xf32, #tpu.memory_space<vmem>>, vector<1x8x128xf32>
    %139 = vector.shape_cast %138 : vector<1x8x128xf32> to vector<8x128xf32>
    %cst_46 = arith.constant dense<0.000000e+00> : vector<8x128xf32>
    %140 = tpu.matmul %132, %15, %cst_46 {dimension_numbers = #tpu.dot_dimension_numbers<[1], [0], [0], [1], [0, 0, 1, 1], [], []>} : vector<8x32xf32>, vector<32x128xf32>, vector<8x128xf32> -> vector<8x128xf32>
    %141 = arith.addf %139, %140 : vector<8x128xf32>
    %142 = arith.negf %141 : vector<8x128xf32>
    %143 = math.exp %142 : vector<8x128xf32>
    %cst_47 = arith.constant 1.000000e+00 : f32
    %144 = vector.broadcast %cst_47 : f32 to vector<8x128xf32>
    %145 = arith.addf %144, %143 : vector<8x128xf32>
    %146 = arith.divf %144, %145 : vector<8x128xf32>
    %147 = math.tanh %141 : vector<8x128xf32>
    %148 = vector.extract_strided_slice %146 {offsets = [0, 0], sizes = [8, 32], strides = [1, 1]} : vector<8x128xf32> to vector<8x32xf32>
    %149 = vector.extract_strided_slice %146 {offsets = [0, 32], sizes = [8, 32], strides = [1, 1]} : vector<8x128xf32> to vector<8x32xf32>
    %150 = vector.extract_strided_slice %146 {offsets = [0, 96], sizes = [8, 32], strides = [1, 1]} : vector<8x128xf32> to vector<8x32xf32>
    %151 = vector.extract_strided_slice %147 {offsets = [0, 64], sizes = [8, 32], strides = [1, 1]} : vector<8x128xf32> to vector<8x32xf32>
    %152 = arith.mulf %149, %130 : vector<8x32xf32>
    %153 = arith.mulf %148, %151 : vector<8x32xf32>
    %154 = arith.addf %152, %153 : vector<8x32xf32>
    %155 = math.tanh %154 : vector<8x32xf32>
    %156 = arith.mulf %150, %155 : vector<8x32xf32>
    %157 = arith.index_cast %c5_i32 : i32 to index
    %c0_48 = arith.constant 0 : index
    %c0_49 = arith.constant 0 : index
    %158 = vector.load %arg11[%157, %c0_48, %c0_49] : memref<8x8x32xf32, #tpu.memory_space<vmem>>, vector<1x8x32xf32>
    %159 = vector.shape_cast %158 : vector<1x8x32xf32> to vector<8x32xf32>
    %160 = vector.shape_cast %156 : vector<8x32xf32> to vector<1x8x32xf32>
    tpu.vector_store %arg11[%157, %c0_48, %c0_49], %160 {strides = array<i32>} : memref<8x8x32xf32, #tpu.memory_space<vmem>>, vector<1x8x32xf32>,
    %c6_i32 = arith.constant 6 : i32
    %161 = arith.index_cast %c6_i32 : i32 to index
    %c0_50 = arith.constant 0 : index
    %c0_51 = arith.constant 0 : index
    %162 = vector.load %arg10[%161, %c0_50, %c0_51] : memref<8x8x128xf32, #tpu.memory_space<vmem>>, vector<1x8x128xf32>
    %163 = vector.shape_cast %162 : vector<1x8x128xf32> to vector<8x128xf32>
    %cst_52 = arith.constant dense<0.000000e+00> : vector<8x128xf32>
    %164 = tpu.matmul %156, %15, %cst_52 {dimension_numbers = #tpu.dot_dimension_numbers<[1], [0], [0], [1], [0, 0, 1, 1], [], []>} : vector<8x32xf32>, vector<32x128xf32>, vector<8x128xf32> -> vector<8x128xf32>
    %165 = arith.addf %163, %164 : vector<8x128xf32>
    %166 = arith.negf %165 : vector<8x128xf32>
    %167 = math.exp %166 : vector<8x128xf32>
    %cst_53 = arith.constant 1.000000e+00 : f32
    %168 = vector.broadcast %cst_53 : f32 to vector<8x128xf32>
    %169 = arith.addf %168, %167 : vector<8x128xf32>
    %170 = arith.divf %168, %169 : vector<8x128xf32>
    %171 = math.tanh %165 : vector<8x128xf32>
    %172 = vector.extract_strided_slice %170 {offsets = [0, 0], sizes = [8, 32], strides = [1, 1]} : vector<8x128xf32> to vector<8x32xf32>
    %173 = vector.extract_strided_slice %170 {offsets = [0, 32], sizes = [8, 32], strides = [1, 1]} : vector<8x128xf32> to vector<8x32xf32>
    %174 = vector.extract_strided_slice %170 {offsets = [0, 96], sizes = [8, 32], strides = [1, 1]} : vector<8x128xf32> to vector<8x32xf32>
    %175 = vector.extract_strided_slice %171 {offsets = [0, 64], sizes = [8, 32], strides = [1, 1]} : vector<8x128xf32> to vector<8x32xf32>
    %176 = arith.mulf %173, %154 : vector<8x32xf32>
    %177 = arith.mulf %172, %175 : vector<8x32xf32>
    %178 = arith.addf %176, %177 : vector<8x32xf32>
    %179 = math.tanh %178 : vector<8x32xf32>
    %180 = arith.mulf %174, %179 : vector<8x32xf32>
    %181 = arith.index_cast %c6_i32 : i32 to index
    %c0_54 = arith.constant 0 : index
    %c0_55 = arith.constant 0 : index
    %182 = vector.load %arg11[%181, %c0_54, %c0_55] : memref<8x8x32xf32, #tpu.memory_space<vmem>>, vector<1x8x32xf32>
    %183 = vector.shape_cast %182 : vector<1x8x32xf32> to vector<8x32xf32>
    %184 = vector.shape_cast %180 : vector<8x32xf32> to vector<1x8x32xf32>
    tpu.vector_store %arg11[%181, %c0_54, %c0_55], %184 {strides = array<i32>} : memref<8x8x32xf32, #tpu.memory_space<vmem>>, vector<1x8x32xf32>,
    %c7_i32 = arith.constant 7 : i32
    %185 = arith.index_cast %c7_i32 : i32 to index
    %c0_56 = arith.constant 0 : index
    %c0_57 = arith.constant 0 : index
    %186 = vector.load %arg10[%185, %c0_56, %c0_57] : memref<8x8x128xf32, #tpu.memory_space<vmem>>, vector<1x8x128xf32>
    %187 = vector.shape_cast %186 : vector<1x8x128xf32> to vector<8x128xf32>
    %cst_58 = arith.constant dense<0.000000e+00> : vector<8x128xf32>
    %188 = tpu.matmul %180, %15, %cst_58 {dimension_numbers = #tpu.dot_dimension_numbers<[1], [0], [0], [1], [0, 0, 1, 1], [], []>} : vector<8x32xf32>, vector<32x128xf32>, vector<8x128xf32> -> vector<8x128xf32>
    %189 = arith.addf %187, %188 : vector<8x128xf32>
    %190 = arith.negf %189 : vector<8x128xf32>
    %191 = math.exp %190 : vector<8x128xf32>
    %cst_59 = arith.constant 1.000000e+00 : f32
    %192 = vector.broadcast %cst_59 : f32 to vector<8x128xf32>
    %193 = arith.addf %192, %191 : vector<8x128xf32>
    %194 = arith.divf %192, %193 : vector<8x128xf32>
    %195 = math.tanh %189 : vector<8x128xf32>
    %196 = vector.extract_strided_slice %194 {offsets = [0, 0], sizes = [8, 32], strides = [1, 1]} : vector<8x128xf32> to vector<8x32xf32>
    %197 = vector.extract_strided_slice %194 {offsets = [0, 32], sizes = [8, 32], strides = [1, 1]} : vector<8x128xf32> to vector<8x32xf32>
    %198 = vector.extract_strided_slice %194 {offsets = [0, 96], sizes = [8, 32], strides = [1, 1]} : vector<8x128xf32> to vector<8x32xf32>
    %199 = vector.extract_strided_slice %195 {offsets = [0, 64], sizes = [8, 32], strides = [1, 1]} : vector<8x128xf32> to vector<8x32xf32>
    %200 = arith.mulf %197, %178 : vector<8x32xf32>
    %201 = arith.mulf %196, %199 : vector<8x32xf32>
    %202 = arith.addf %200, %201 : vector<8x32xf32>
    %203 = math.tanh %202 : vector<8x32xf32>
    %204 = arith.mulf %198, %203 : vector<8x32xf32>
    %205 = arith.index_cast %c7_i32 : i32 to index
    %c0_60 = arith.constant 0 : index
    %c0_61 = arith.constant 0 : index
    %206 = vector.load %arg11[%205, %c0_60, %c0_61] : memref<8x8x32xf32, #tpu.memory_space<vmem>>, vector<1x8x32xf32>
    %207 = vector.shape_cast %206 : vector<1x8x32xf32> to vector<8x32xf32>
    %208 = vector.shape_cast %204 : vector<8x32xf32> to vector<1x8x32xf32>
    tpu.vector_store %arg11[%205, %c0_60, %c0_61], %208 {strides = array<i32>} : memref<8x8x32xf32, #tpu.memory_space<vmem>>, vector<1x8x32xf32>,
    %c8_i32 = arith.constant 8 : i32
    %c1 = arith.constant 1 : index
    %c0_62 = arith.constant 0 : index
    %c0_63 = arith.constant 0 : index
    %209 = vector.load %arg6[%c1, %c0_62, %c0_63] : memref<2x32x128xf32, #tpu.memory_space<vmem>>, vector<1x32x128xf32>
    %210 = vector.shape_cast %209 : vector<1x32x128xf32> to vector<32x128xf32>
    %c0_64 = arith.constant 0 : index
    %c0_65 = arith.constant 0 : index
    %c0_66 = arith.constant 0 : index
    %211 = vector.load %arg11[%c0_64, %c0_65, %c0_66] : memref<8x8x32xf32, #tpu.memory_space<vmem>>, vector<8x8x32xf32>
    %212 = vector.shape_cast %211 : vector<8x8x32xf32> to vector<64x32xf32>
    %c1_67 = arith.constant 1 : index
    %c0_68 = arith.constant 0 : index
    %c0_69 = arith.constant 0 : index
    %213 = vector.load %arg5[%c1_67, %c0_68, %c0_69] : memref<2x32x128xf32, #tpu.memory_space<vmem>>, vector<1x32x128xf32>
    %214 = vector.shape_cast %213 : vector<1x32x128xf32> to vector<32x128xf32>
    %cst_70 = arith.constant dense<0.000000e+00> : vector<64x128xf32>
    %215 = tpu.matmul %212, %214, %cst_70 {dimension_numbers = #tpu.dot_dimension_numbers<[1], [0], [0], [1], [0, 0, 1, 1], [], []>} : vector<64x32xf32>, vector<32x128xf32>, vector<64x128xf32> -> vector<64x128xf32>
    %c1_71 = arith.constant 1 : index
    %c0_72 = arith.constant 0 : index
    %c0_73 = arith.constant 0 : index
    %216 = vector.load %arg4[%c1_71, %c0_72, %c0_73] : memref<2x1x128xf32, #tpu.memory_space<vmem>>, vector<1x1x128xf32>
    %217 = vector.shape_cast %216 : vector<1x1x128xf32> to vector<1x128xf32>
    %218 = vector.broadcast %217 : vector<1x128xf32> to vector<64x128xf32>
    %219 = arith.addf %215, %218 : vector<64x128xf32>
    %220 = vector.shape_cast %219 : vector<64x128xf32> to vector<8x8x128xf32>
    %c0_74 = arith.constant 0 : index
    %c0_75 = arith.constant 0 : index
    %c0_76 = arith.constant 0 : index
    %221 = vector.load %arg10[%c0_74, %c0_75, %c0_76] : memref<8x8x128xf32, #tpu.memory_space<vmem>>, vector<8x8x128xf32>
    tpu.vector_store %arg10[%c0_74, %c0_75, %c0_76], %220 {strides = array<i32>} : memref<8x8x128xf32, #tpu.memory_space<vmem>>, vector<8x8x128xf32>,
    %cst_77 = arith.constant 0.000000e+00 : f32
    %222 = vector.broadcast %cst_77 : f32 to vector<8x32xf32>
    %cst_78 = arith.constant 0xFF800000 : f32
    %223 = vector.broadcast %cst_78 : f32 to vector<8x32xf32>
    %c0_i32_79 = arith.constant 0 : i32
    %224 = arith.index_cast %c0_i32_79 : i32 to index
    %c0_80 = arith.constant 0 : index
    %c0_81 = arith.constant 0 : index
    %225 = vector.load %arg10[%224, %c0_80, %c0_81] : memref<8x8x128xf32, #tpu.memory_space<vmem>>, vector<1x8x128xf32>
    %226 = vector.shape_cast %225 : vector<1x8x128xf32> to vector<8x128xf32>
    %cst_82 = arith.constant dense<0.000000e+00> : vector<8x128xf32>
    %227 = tpu.matmul %222, %210, %cst_82 {dimension_numbers = #tpu.dot_dimension_numbers<[1], [0], [0], [1], [0, 0, 1, 1], [], []>} : vector<8x32xf32>, vector<32x128xf32>, vector<8x128xf32> -> vector<8x128xf32>
    %228 = arith.addf %226, %227 : vector<8x128xf32>
    %229 = arith.negf %228 : vector<8x128xf32>
    %230 = math.exp %229 : vector<8x128xf32>
    %cst_83 = arith.constant 1.000000e+00 : f32
    %231 = vector.broadcast %cst_83 : f32 to vector<8x128xf32>
    %232 = arith.addf %231, %230 : vector<8x128xf32>
    %233 = arith.divf %231, %232 : vector<8x128xf32>
    %234 = math.tanh %228 : vector<8x128xf32>
    %235 = vector.extract_strided_slice %233 {offsets = [0, 0], sizes = [8, 32], strides = [1, 1]} : vector<8x128xf32> to vector<8x32xf32>
    %236 = vector.extract_strided_slice %233 {offsets = [0, 32], sizes = [8, 32], strides = [1, 1]} : vector<8x128xf32> to vector<8x32xf32>
    %237 = vector.extract_strided_slice %233 {offsets = [0, 96], sizes = [8, 32], strides = [1, 1]} : vector<8x128xf32> to vector<8x32xf32>
    %238 = vector.extract_strided_slice %234 {offsets = [0, 64], sizes = [8, 32], strides = [1, 1]} : vector<8x128xf32> to vector<8x32xf32>
    %239 = arith.mulf %236, %222 : vector<8x32xf32>
    %240 = arith.mulf %235, %238 : vector<8x32xf32>
    %241 = arith.addf %239, %240 : vector<8x32xf32>
    %242 = math.tanh %241 : vector<8x32xf32>
    %243 = arith.mulf %237, %242 : vector<8x32xf32>
    %244 = vector.broadcast %c0_i32_79 : i32 to vector<8x1xi32>
    %245 = arith.cmpi slt, %244, %0 : vector<8x1xi32>
    %c1_i32_84 = arith.constant 1 : i32
    %246 = vector.broadcast %c1_i32_84 : i32 to vector<8x1xi32>
    %247 = arith.subi %0, %246 : vector<8x1xi32>
    %248 = vector.broadcast %c0_i32_79 : i32 to vector<8x1xi32>
    %249 = arith.cmpi eq, %248, %247 : vector<8x1xi32>
    %cst_85 = arith.constant 0.000000e+00 : f32
    %250 = vector.shape_cast %245 : vector<8x1xi1> to vector<8x1xi1>
    %251 = vector.broadcast %250 : vector<8x1xi1> to vector<8x32xi1>
    %252 = vector.broadcast %cst_85 : f32 to vector<8x32xf32>
    %253 = arith.select %251, %243, %252 : vector<8x32xi1>, vector<8x32xf32>
    %254 = arith.addf %222, %253 : vector<8x32xf32>
    %255 = arith.maximumf %223, %243 : vector<8x32xf32>
    %256 = vector.shape_cast %245 : vector<8x1xi1> to vector<8x1xi1>
    %257 = vector.broadcast %256 : vector<8x1xi1> to vector<8x32xi1>
    %258 = arith.select %257, %255, %223 : vector<8x32xi1>, vector<8x32xf32>
    %259 = vector.shape_cast %249 : vector<8x1xi1> to vector<8x1xi1>
    %260 = vector.broadcast %259 : vector<8x1xi1> to vector<8x32xi1>
    %261 = arith.select %260, %243, %222 : vector<8x32xi1>, vector<8x32xf32>
    %c1_i32_86 = arith.constant 1 : i32
    %262 = arith.index_cast %c1_i32_86 : i32 to index
    %c0_87 = arith.constant 0 : index
    %c0_88 = arith.constant 0 : index
    %263 = vector.load %arg10[%262, %c0_87, %c0_88] : memref<8x8x128xf32, #tpu.memory_space<vmem>>, vector<1x8x128xf32>
    %264 = vector.shape_cast %263 : vector<1x8x128xf32> to vector<8x128xf32>
    %cst_89 = arith.constant dense<0.000000e+00> : vector<8x128xf32>
    %265 = tpu.matmul %243, %210, %cst_89 {dimension_numbers = #tpu.dot_dimension_numbers<[1], [0], [0], [1], [0, 0, 1, 1], [], []>} : vector<8x32xf32>, vector<32x128xf32>, vector<8x128xf32> -> vector<8x128xf32>
    %266 = arith.addf %264, %265 : vector<8x128xf32>
    %267 = arith.negf %266 : vector<8x128xf32>
    %268 = math.exp %267 : vector<8x128xf32>
    %cst_90 = arith.constant 1.000000e+00 : f32
    %269 = vector.broadcast %cst_90 : f32 to vector<8x128xf32>
    %270 = arith.addf %269, %268 : vector<8x128xf32>
    %271 = arith.divf %269, %270 : vector<8x128xf32>
    %272 = math.tanh %266 : vector<8x128xf32>
    %273 = vector.extract_strided_slice %271 {offsets = [0, 0], sizes = [8, 32], strides = [1, 1]} : vector<8x128xf32> to vector<8x32xf32>
    %274 = vector.extract_strided_slice %271 {offsets = [0, 32], sizes = [8, 32], strides = [1, 1]} : vector<8x128xf32> to vector<8x32xf32>
    %275 = vector.extract_strided_slice %271 {offsets = [0, 96], sizes = [8, 32], strides = [1, 1]} : vector<8x128xf32> to vector<8x32xf32>
    %276 = vector.extract_strided_slice %272 {offsets = [0, 64], sizes = [8, 32], strides = [1, 1]} : vector<8x128xf32> to vector<8x32xf32>
    %277 = arith.mulf %274, %241 : vector<8x32xf32>
    %278 = arith.mulf %273, %276 : vector<8x32xf32>
    %279 = arith.addf %277, %278 : vector<8x32xf32>
    %280 = math.tanh %279 : vector<8x32xf32>
    %281 = arith.mulf %275, %280 : vector<8x32xf32>
    %282 = vector.broadcast %c1_i32_86 : i32 to vector<8x1xi32>
    %283 = arith.cmpi slt, %282, %0 : vector<8x1xi32>
    %c1_i32_91 = arith.constant 1 : i32
    %284 = vector.broadcast %c1_i32_91 : i32 to vector<8x1xi32>
    %285 = arith.subi %0, %284 : vector<8x1xi32>
    %286 = vector.broadcast %c1_i32_86 : i32 to vector<8x1xi32>
    %287 = arith.cmpi eq, %286, %285 : vector<8x1xi32>
    %cst_92 = arith.constant 0.000000e+00 : f32
    %288 = vector.shape_cast %283 : vector<8x1xi1> to vector<8x1xi1>
    %289 = vector.broadcast %288 : vector<8x1xi1> to vector<8x32xi1>
    %290 = vector.broadcast %cst_92 : f32 to vector<8x32xf32>
    %291 = arith.select %289, %281, %290 : vector<8x32xi1>, vector<8x32xf32>
    %292 = arith.addf %254, %291 : vector<8x32xf32>
    %293 = arith.maximumf %258, %281 : vector<8x32xf32>
    %294 = vector.shape_cast %283 : vector<8x1xi1> to vector<8x1xi1>
    %295 = vector.broadcast %294 : vector<8x1xi1> to vector<8x32xi1>
    %296 = arith.select %295, %293, %258 : vector<8x32xi1>, vector<8x32xf32>
    %297 = vector.shape_cast %287 : vector<8x1xi1> to vector<8x1xi1>
    %298 = vector.broadcast %297 : vector<8x1xi1> to vector<8x32xi1>
    %299 = arith.select %298, %281, %261 : vector<8x32xi1>, vector<8x32xf32>
    %c2_i32_93 = arith.constant 2 : i32
    %300 = arith.index_cast %c2_i32_93 : i32 to index
    %c0_94 = arith.constant 0 : index
    %c0_95 = arith.constant 0 : index
    %301 = vector.load %arg10[%300, %c0_94, %c0_95] : memref<8x8x128xf32, #tpu.memory_space<vmem>>, vector<1x8x128xf32>
    %302 = vector.shape_cast %301 : vector<1x8x128xf32> to vector<8x128xf32>
    %cst_96 = arith.constant dense<0.000000e+00> : vector<8x128xf32>
    %303 = tpu.matmul %281, %210, %cst_96 {dimension_numbers = #tpu.dot_dimension_numbers<[1], [0], [0], [1], [0, 0, 1, 1], [], []>} : vector<8x32xf32>, vector<32x128xf32>, vector<8x128xf32> -> vector<8x128xf32>
    %304 = arith.addf %302, %303 : vector<8x128xf32>
    %305 = arith.negf %304 : vector<8x128xf32>
    %306 = math.exp %305 : vector<8x128xf32>
    %cst_97 = arith.constant 1.000000e+00 : f32
    %307 = vector.broadcast %cst_97 : f32 to vector<8x128xf32>
    %308 = arith.addf %307, %306 : vector<8x128xf32>
    %309 = arith.divf %307, %308 : vector<8x128xf32>
    %310 = math.tanh %304 : vector<8x128xf32>
    %311 = vector.extract_strided_slice %309 {offsets = [0, 0], sizes = [8, 32], strides = [1, 1]} : vector<8x128xf32> to vector<8x32xf32>
    %312 = vector.extract_strided_slice %309 {offsets = [0, 32], sizes = [8, 32], strides = [1, 1]} : vector<8x128xf32> to vector<8x32xf32>
    %313 = vector.extract_strided_slice %309 {offsets = [0, 96], sizes = [8, 32], strides = [1, 1]} : vector<8x128xf32> to vector<8x32xf32>
    %314 = vector.extract_strided_slice %310 {offsets = [0, 64], sizes = [8, 32], strides = [1, 1]} : vector<8x128xf32> to vector<8x32xf32>
    %315 = arith.mulf %312, %279 : vector<8x32xf32>
    %316 = arith.mulf %311, %314 : vector<8x32xf32>
    %317 = arith.addf %315, %316 : vector<8x32xf32>
    %318 = math.tanh %317 : vector<8x32xf32>
    %319 = arith.mulf %313, %318 : vector<8x32xf32>
    %320 = vector.broadcast %c2_i32_93 : i32 to vector<8x1xi32>
    %321 = arith.cmpi slt, %320, %0 : vector<8x1xi32>
    %c1_i32_98 = arith.constant 1 : i32
    %322 = vector.broadcast %c1_i32_98 : i32 to vector<8x1xi32>
    %323 = arith.subi %0, %322 : vector<8x1xi32>
    %324 = vector.broadcast %c2_i32_93 : i32 to vector<8x1xi32>
    %325 = arith.cmpi eq, %324, %323 : vector<8x1xi32>
    %cst_99 = arith.constant 0.000000e+00 : f32
    %326 = vector.shape_cast %321 : vector<8x1xi1> to vector<8x1xi1>
    %327 = vector.broadcast %326 : vector<8x1xi1> to vector<8x32xi1>
    %328 = vector.broadcast %cst_99 : f32 to vector<8x32xf32>
    %329 = arith.select %327, %319, %328 : vector<8x32xi1>, vector<8x32xf32>
    %330 = arith.addf %292, %329 : vector<8x32xf32>
    %331 = arith.maximumf %296, %319 : vector<8x32xf32>
    %332 = vector.shape_cast %321 : vector<8x1xi1> to vector<8x1xi1>
    %333 = vector.broadcast %332 : vector<8x1xi1> to vector<8x32xi1>
    %334 = arith.select %333, %331, %296 : vector<8x32xi1>, vector<8x32xf32>
    %335 = vector.shape_cast %325 : vector<8x1xi1> to vector<8x1xi1>
    %336 = vector.broadcast %335 : vector<8x1xi1> to vector<8x32xi1>
    %337 = arith.select %336, %319, %299 : vector<8x32xi1>, vector<8x32xf32>
    %c3_i32_100 = arith.constant 3 : i32
    %338 = arith.index_cast %c3_i32_100 : i32 to index
    %c0_101 = arith.constant 0 : index
    %c0_102 = arith.constant 0 : index
    %339 = vector.load %arg10[%338, %c0_101, %c0_102] : memref<8x8x128xf32, #tpu.memory_space<vmem>>, vector<1x8x128xf32>
    %340 = vector.shape_cast %339 : vector<1x8x128xf32> to vector<8x128xf32>
    %cst_103 = arith.constant dense<0.000000e+00> : vector<8x128xf32>
    %341 = tpu.matmul %319, %210, %cst_103 {dimension_numbers = #tpu.dot_dimension_numbers<[1], [0], [0], [1], [0, 0, 1, 1], [], []>} : vector<8x32xf32>, vector<32x128xf32>, vector<8x128xf32> -> vector<8x128xf32>
    %342 = arith.addf %340, %341 : vector<8x128xf32>
    %343 = arith.negf %342 : vector<8x128xf32>
    %344 = math.exp %343 : vector<8x128xf32>
    %cst_104 = arith.constant 1.000000e+00 : f32
    %345 = vector.broadcast %cst_104 : f32 to vector<8x128xf32>
    %346 = arith.addf %345, %344 : vector<8x128xf32>
    %347 = arith.divf %345, %346 : vector<8x128xf32>
    %348 = math.tanh %342 : vector<8x128xf32>
    %349 = vector.extract_strided_slice %347 {offsets = [0, 0], sizes = [8, 32], strides = [1, 1]} : vector<8x128xf32> to vector<8x32xf32>
    %350 = vector.extract_strided_slice %347 {offsets = [0, 32], sizes = [8, 32], strides = [1, 1]} : vector<8x128xf32> to vector<8x32xf32>
    %351 = vector.extract_strided_slice %347 {offsets = [0, 96], sizes = [8, 32], strides = [1, 1]} : vector<8x128xf32> to vector<8x32xf32>
    %352 = vector.extract_strided_slice %348 {offsets = [0, 64], sizes = [8, 32], strides = [1, 1]} : vector<8x128xf32> to vector<8x32xf32>
    %353 = arith.mulf %350, %317 : vector<8x32xf32>
    %354 = arith.mulf %349, %352 : vector<8x32xf32>
    %355 = arith.addf %353, %354 : vector<8x32xf32>
    %356 = math.tanh %355 : vector<8x32xf32>
    %357 = arith.mulf %351, %356 : vector<8x32xf32>
    %358 = vector.broadcast %c3_i32_100 : i32 to vector<8x1xi32>
    %359 = arith.cmpi slt, %358, %0 : vector<8x1xi32>
    %c1_i32_105 = arith.constant 1 : i32
    %360 = vector.broadcast %c1_i32_105 : i32 to vector<8x1xi32>
    %361 = arith.subi %0, %360 : vector<8x1xi32>
    %362 = vector.broadcast %c3_i32_100 : i32 to vector<8x1xi32>
    %363 = arith.cmpi eq, %362, %361 : vector<8x1xi32>
    %cst_106 = arith.constant 0.000000e+00 : f32
    %364 = vector.shape_cast %359 : vector<8x1xi1> to vector<8x1xi1>
    %365 = vector.broadcast %364 : vector<8x1xi1> to vector<8x32xi1>
    %366 = vector.broadcast %cst_106 : f32 to vector<8x32xf32>
    %367 = arith.select %365, %357, %366 : vector<8x32xi1>, vector<8x32xf32>
    %368 = arith.addf %330, %367 : vector<8x32xf32>
    %369 = arith.maximumf %334, %357 : vector<8x32xf32>
    %370 = vector.shape_cast %359 : vector<8x1xi1> to vector<8x1xi1>
    %371 = vector.broadcast %370 : vector<8x1xi1> to vector<8x32xi1>
    %372 = arith.select %371, %369, %334 : vector<8x32xi1>, vector<8x32xf32>
    %373 = vector.shape_cast %363 : vector<8x1xi1> to vector<8x1xi1>
    %374 = vector.broadcast %373 : vector<8x1xi1> to vector<8x32xi1>
    %375 = arith.select %374, %357, %337 : vector<8x32xi1>, vector<8x32xf32>
    %c4_i32_107 = arith.constant 4 : i32
    %376 = arith.index_cast %c4_i32_107 : i32 to index
    %c0_108 = arith.constant 0 : index
    %c0_109 = arith.constant 0 : index
    %377 = vector.load %arg10[%376, %c0_108, %c0_109] : memref<8x8x128xf32, #tpu.memory_space<vmem>>, vector<1x8x128xf32>
    %378 = vector.shape_cast %377 : vector<1x8x128xf32> to vector<8x128xf32>
    %cst_110 = arith.constant dense<0.000000e+00> : vector<8x128xf32>
    %379 = tpu.matmul %357, %210, %cst_110 {dimension_numbers = #tpu.dot_dimension_numbers<[1], [0], [0], [1], [0, 0, 1, 1], [], []>} : vector<8x32xf32>, vector<32x128xf32>, vector<8x128xf32> -> vector<8x128xf32>
    %380 = arith.addf %378, %379 : vector<8x128xf32>
    %381 = arith.negf %380 : vector<8x128xf32>
    %382 = math.exp %381 : vector<8x128xf32>
    %cst_111 = arith.constant 1.000000e+00 : f32
    %383 = vector.broadcast %cst_111 : f32 to vector<8x128xf32>
    %384 = arith.addf %383, %382 : vector<8x128xf32>
    %385 = arith.divf %383, %384 : vector<8x128xf32>
    %386 = math.tanh %380 : vector<8x128xf32>
    %387 = vector.extract_strided_slice %385 {offsets = [0, 0], sizes = [8, 32], strides = [1, 1]} : vector<8x128xf32> to vector<8x32xf32>
    %388 = vector.extract_strided_slice %385 {offsets = [0, 32], sizes = [8, 32], strides = [1, 1]} : vector<8x128xf32> to vector<8x32xf32>
    %389 = vector.extract_strided_slice %385 {offsets = [0, 96], sizes = [8, 32], strides = [1, 1]} : vector<8x128xf32> to vector<8x32xf32>
    %390 = vector.extract_strided_slice %386 {offsets = [0, 64], sizes = [8, 32], strides = [1, 1]} : vector<8x128xf32> to vector<8x32xf32>
    %391 = arith.mulf %388, %355 : vector<8x32xf32>
    %392 = arith.mulf %387, %390 : vector<8x32xf32>
    %393 = arith.addf %391, %392 : vector<8x32xf32>
    %394 = math.tanh %393 : vector<8x32xf32>
    %395 = arith.mulf %389, %394 : vector<8x32xf32>
    %396 = vector.broadcast %c4_i32_107 : i32 to vector<8x1xi32>
    %397 = arith.cmpi slt, %396, %0 : vector<8x1xi32>
    %c1_i32_112 = arith.constant 1 : i32
    %398 = vector.broadcast %c1_i32_112 : i32 to vector<8x1xi32>
    %399 = arith.subi %0, %398 : vector<8x1xi32>
    %400 = vector.broadcast %c4_i32_107 : i32 to vector<8x1xi32>
    %401 = arith.cmpi eq, %400, %399 : vector<8x1xi32>
    %cst_113 = arith.constant 0.000000e+00 : f32
    %402 = vector.shape_cast %397 : vector<8x1xi1> to vector<8x1xi1>
    %403 = vector.broadcast %402 : vector<8x1xi1> to vector<8x32xi1>
    %404 = vector.broadcast %cst_113 : f32 to vector<8x32xf32>
    %405 = arith.select %403, %395, %404 : vector<8x32xi1>, vector<8x32xf32>
    %406 = arith.addf %368, %405 : vector<8x32xf32>
    %407 = arith.maximumf %372, %395 : vector<8x32xf32>
    %408 = vector.shape_cast %397 : vector<8x1xi1> to vector<8x1xi1>
    %409 = vector.broadcast %408 : vector<8x1xi1> to vector<8x32xi1>
    %410 = arith.select %409, %407, %372 : vector<8x32xi1>, vector<8x32xf32>
    %411 = vector.shape_cast %401 : vector<8x1xi1> to vector<8x1xi1>
    %412 = vector.broadcast %411 : vector<8x1xi1> to vector<8x32xi1>
    %413 = arith.select %412, %395, %375 : vector<8x32xi1>, vector<8x32xf32>
    %c5_i32_114 = arith.constant 5 : i32
    %414 = arith.index_cast %c5_i32_114 : i32 to index
    %c0_115 = arith.constant 0 : index
    %c0_116 = arith.constant 0 : index
    %415 = vector.load %arg10[%414, %c0_115, %c0_116] : memref<8x8x128xf32, #tpu.memory_space<vmem>>, vector<1x8x128xf32>
    %416 = vector.shape_cast %415 : vector<1x8x128xf32> to vector<8x128xf32>
    %cst_117 = arith.constant dense<0.000000e+00> : vector<8x128xf32>
    %417 = tpu.matmul %395, %210, %cst_117 {dimension_numbers = #tpu.dot_dimension_numbers<[1], [0], [0], [1], [0, 0, 1, 1], [], []>} : vector<8x32xf32>, vector<32x128xf32>, vector<8x128xf32> -> vector<8x128xf32>
    %418 = arith.addf %416, %417 : vector<8x128xf32>
    %419 = arith.negf %418 : vector<8x128xf32>
    %420 = math.exp %419 : vector<8x128xf32>
    %cst_118 = arith.constant 1.000000e+00 : f32
    %421 = vector.broadcast %cst_118 : f32 to vector<8x128xf32>
    %422 = arith.addf %421, %420 : vector<8x128xf32>
    %423 = arith.divf %421, %422 : vector<8x128xf32>
    %424 = math.tanh %418 : vector<8x128xf32>
    %425 = vector.extract_strided_slice %423 {offsets = [0, 0], sizes = [8, 32], strides = [1, 1]} : vector<8x128xf32> to vector<8x32xf32>
    %426 = vector.extract_strided_slice %423 {offsets = [0, 32], sizes = [8, 32], strides = [1, 1]} : vector<8x128xf32> to vector<8x32xf32>
    %427 = vector.extract_strided_slice %423 {offsets = [0, 96], sizes = [8, 32], strides = [1, 1]} : vector<8x128xf32> to vector<8x32xf32>
    %428 = vector.extract_strided_slice %424 {offsets = [0, 64], sizes = [8, 32], strides = [1, 1]} : vector<8x128xf32> to vector<8x32xf32>
    %429 = arith.mulf %426, %393 : vector<8x32xf32>
    %430 = arith.mulf %425, %428 : vector<8x32xf32>
    %431 = arith.addf %429, %430 : vector<8x32xf32>
    %432 = math.tanh %431 : vector<8x32xf32>
    %433 = arith.mulf %427, %432 : vector<8x32xf32>
    %434 = vector.broadcast %c5_i32_114 : i32 to vector<8x1xi32>
    %435 = arith.cmpi slt, %434, %0 : vector<8x1xi32>
    %c1_i32_119 = arith.constant 1 : i32
    %436 = vector.broadcast %c1_i32_119 : i32 to vector<8x1xi32>
    %437 = arith.subi %0, %436 : vector<8x1xi32>
    %438 = vector.broadcast %c5_i32_114 : i32 to vector<8x1xi32>
    %439 = arith.cmpi eq, %438, %437 : vector<8x1xi32>
    %cst_120 = arith.constant 0.000000e+00 : f32
    %440 = vector.shape_cast %435 : vector<8x1xi1> to vector<8x1xi1>
    %441 = vector.broadcast %440 : vector<8x1xi1> to vector<8x32xi1>
    %442 = vector.broadcast %cst_120 : f32 to vector<8x32xf32>
    %443 = arith.select %441, %433, %442 : vector<8x32xi1>, vector<8x32xf32>
    %444 = arith.addf %406, %443 : vector<8x32xf32>
    %445 = arith.maximumf %410, %433 : vector<8x32xf32>
    %446 = vector.shape_cast %435 : vector<8x1xi1> to vector<8x1xi1>
    %447 = vector.broadcast %446 : vector<8x1xi1> to vector<8x32xi1>
    %448 = arith.select %447, %445, %410 : vector<8x32xi1>, vector<8x32xf32>
    %449 = vector.shape_cast %439 : vector<8x1xi1> to vector<8x1xi1>
    %450 = vector.broadcast %449 : vector<8x1xi1> to vector<8x32xi1>
    %451 = arith.select %450, %433, %413 : vector<8x32xi1>, vector<8x32xf32>
    %c6_i32_121 = arith.constant 6 : i32
    %452 = arith.index_cast %c6_i32_121 : i32 to index
    %c0_122 = arith.constant 0 : index
    %c0_123 = arith.constant 0 : index
    %453 = vector.load %arg10[%452, %c0_122, %c0_123] : memref<8x8x128xf32, #tpu.memory_space<vmem>>, vector<1x8x128xf32>
    %454 = vector.shape_cast %453 : vector<1x8x128xf32> to vector<8x128xf32>
    %cst_124 = arith.constant dense<0.000000e+00> : vector<8x128xf32>
    %455 = tpu.matmul %433, %210, %cst_124 {dimension_numbers = #tpu.dot_dimension_numbers<[1], [0], [0], [1], [0, 0, 1, 1], [], []>} : vector<8x32xf32>, vector<32x128xf32>, vector<8x128xf32> -> vector<8x128xf32>
    %456 = arith.addf %454, %455 : vector<8x128xf32>
    %457 = arith.negf %456 : vector<8x128xf32>
    %458 = math.exp %457 : vector<8x128xf32>
    %cst_125 = arith.constant 1.000000e+00 : f32
    %459 = vector.broadcast %cst_125 : f32 to vector<8x128xf32>
    %460 = arith.addf %459, %458 : vector<8x128xf32>
    %461 = arith.divf %459, %460 : vector<8x128xf32>
    %462 = math.tanh %456 : vector<8x128xf32>
    %463 = vector.extract_strided_slice %461 {offsets = [0, 0], sizes = [8, 32], strides = [1, 1]} : vector<8x128xf32> to vector<8x32xf32>
    %464 = vector.extract_strided_slice %461 {offsets = [0, 32], sizes = [8, 32], strides = [1, 1]} : vector<8x128xf32> to vector<8x32xf32>
    %465 = vector.extract_strided_slice %461 {offsets = [0, 96], sizes = [8, 32], strides = [1, 1]} : vector<8x128xf32> to vector<8x32xf32>
    %466 = vector.extract_strided_slice %462 {offsets = [0, 64], sizes = [8, 32], strides = [1, 1]} : vector<8x128xf32> to vector<8x32xf32>
    %467 = arith.mulf %464, %431 : vector<8x32xf32>
    %468 = arith.mulf %463, %466 : vector<8x32xf32>
    %469 = arith.addf %467, %468 : vector<8x32xf32>
    %470 = math.tanh %469 : vector<8x32xf32>
    %471 = arith.mulf %465, %470 : vector<8x32xf32>
    %472 = vector.broadcast %c6_i32_121 : i32 to vector<8x1xi32>
    %473 = arith.cmpi slt, %472, %0 : vector<8x1xi32>
    %c1_i32_126 = arith.constant 1 : i32
    %474 = vector.broadcast %c1_i32_126 : i32 to vector<8x1xi32>
    %475 = arith.subi %0, %474 : vector<8x1xi32>
    %476 = vector.broadcast %c6_i32_121 : i32 to vector<8x1xi32>
    %477 = arith.cmpi eq, %476, %475 : vector<8x1xi32>
    %cst_127 = arith.constant 0.000000e+00 : f32
    %478 = vector.shape_cast %473 : vector<8x1xi1> to vector<8x1xi1>
    %479 = vector.broadcast %478 : vector<8x1xi1> to vector<8x32xi1>
    %480 = vector.broadcast %cst_127 : f32 to vector<8x32xf32>
    %481 = arith.select %479, %471, %480 : vector<8x32xi1>, vector<8x32xf32>
    %482 = arith.addf %444, %481 : vector<8x32xf32>
    %483 = arith.maximumf %448, %471 : vector<8x32xf32>
    %484 = vector.shape_cast %473 : vector<8x1xi1> to vector<8x1xi1>
    %485 = vector.broadcast %484 : vector<8x1xi1> to vector<8x32xi1>
    %486 = arith.select %485, %483, %448 : vector<8x32xi1>, vector<8x32xf32>
    %487 = vector.shape_cast %477 : vector<8x1xi1> to vector<8x1xi1>
    %488 = vector.broadcast %487 : vector<8x1xi1> to vector<8x32xi1>
    %489 = arith.select %488, %471, %451 : vector<8x32xi1>, vector<8x32xf32>
    %c7_i32_128 = arith.constant 7 : i32
    %490 = arith.index_cast %c7_i32_128 : i32 to index
    %c0_129 = arith.constant 0 : index
    %c0_130 = arith.constant 0 : index
    %491 = vector.load %arg10[%490, %c0_129, %c0_130] : memref<8x8x128xf32, #tpu.memory_space<vmem>>, vector<1x8x128xf32>
    %492 = vector.shape_cast %491 : vector<1x8x128xf32> to vector<8x128xf32>
    %cst_131 = arith.constant dense<0.000000e+00> : vector<8x128xf32>
    %493 = tpu.matmul %471, %210, %cst_131 {dimension_numbers = #tpu.dot_dimension_numbers<[1], [0], [0], [1], [0, 0, 1, 1], [], []>} : vector<8x32xf32>, vector<32x128xf32>, vector<8x128xf32> -> vector<8x128xf32>
    %494 = arith.addf %492, %493 : vector<8x128xf32>
    %495 = arith.negf %494 : vector<8x128xf32>
    %496 = math.exp %495 : vector<8x128xf32>
    %cst_132 = arith.constant 1.000000e+00 : f32
    %497 = vector.broadcast %cst_132 : f32 to vector<8x128xf32>
    %498 = arith.addf %497, %496 : vector<8x128xf32>
    %499 = arith.divf %497, %498 : vector<8x128xf32>
    %500 = math.tanh %494 : vector<8x128xf32>
    %501 = vector.extract_strided_slice %499 {offsets = [0, 0], sizes = [8, 32], strides = [1, 1]} : vector<8x128xf32> to vector<8x32xf32>
    %502 = vector.extract_strided_slice %499 {offsets = [0, 32], sizes = [8, 32], strides = [1, 1]} : vector<8x128xf32> to vector<8x32xf32>
    %503 = vector.extract_strided_slice %499 {offsets = [0, 96], sizes = [8, 32], strides = [1, 1]} : vector<8x128xf32> to vector<8x32xf32>
    %504 = vector.extract_strided_slice %500 {offsets = [0, 64], sizes = [8, 32], strides = [1, 1]} : vector<8x128xf32> to vector<8x32xf32>
    %505 = arith.mulf %502, %469 : vector<8x32xf32>
    %506 = arith.mulf %501, %504 : vector<8x32xf32>
    %507 = arith.addf %505, %506 : vector<8x32xf32>
    %508 = math.tanh %507 : vector<8x32xf32>
    %509 = arith.mulf %503, %508 : vector<8x32xf32>
    %510 = vector.broadcast %c7_i32_128 : i32 to vector<8x1xi32>
    %511 = arith.cmpi slt, %510, %0 : vector<8x1xi32>
    %c1_i32_133 = arith.constant 1 : i32
    %512 = vector.broadcast %c1_i32_133 : i32 to vector<8x1xi32>
    %513 = arith.subi %0, %512 : vector<8x1xi32>
    %514 = vector.broadcast %c7_i32_128 : i32 to vector<8x1xi32>
    %515 = arith.cmpi eq, %514, %513 : vector<8x1xi32>
    %cst_134 = arith.constant 0.000000e+00 : f32
    %516 = vector.shape_cast %511 : vector<8x1xi1> to vector<8x1xi1>
    %517 = vector.broadcast %516 : vector<8x1xi1> to vector<8x32xi1>
    %518 = vector.broadcast %cst_134 : f32 to vector<8x32xf32>
    %519 = arith.select %517, %509, %518 : vector<8x32xi1>, vector<8x32xf32>
    %520 = arith.addf %482, %519 : vector<8x32xf32>
    %521 = arith.maximumf %486, %509 : vector<8x32xf32>
    %522 = vector.shape_cast %511 : vector<8x1xi1> to vector<8x1xi1>
    %523 = vector.broadcast %522 : vector<8x1xi1> to vector<8x32xi1>
    %524 = arith.select %523, %521, %486 : vector<8x32xi1>, vector<8x32xf32>
    %525 = vector.shape_cast %515 : vector<8x1xi1> to vector<8x1xi1>
    %526 = vector.broadcast %525 : vector<8x1xi1> to vector<8x32xi1>
    %527 = arith.select %526, %509, %489 : vector<8x32xi1>, vector<8x32xf32>
    %c8_i32_135 = arith.constant 8 : i32
    %c1_i32_136 = arith.constant 1 : i32
    %528 = vector.broadcast %c1_i32_136 : i32 to vector<8x1xi32>
    %529 = arith.maxsi %0, %528 : vector<8x1xi32>
    %530 = arith.sitofp %529 : vector<8x1xi32> to vector<8x1xf32>
    %531 = vector.broadcast %530 : vector<8x1xf32> to vector<8x32xf32>
    %532 = arith.divf %520, %531 : vector<8x32xf32>
    %c0_137 = arith.constant 0 : index
    %c0_138 = arith.constant 0 : index
    %533 = vector.load %arg7[%c0_137, %c0_138] : memref<96x5xf32, #tpu.memory_space<vmem>>, vector<96x5xf32>
    %534 = vector.extract_strided_slice %533 {offsets = [0, 0], sizes = [32, 5], strides = [1, 1]} : vector<96x5xf32> to vector<32x5xf32>
    %cst_139 = arith.constant dense<0.000000e+00> : vector<8x5xf32>
    %535 = tpu.matmul %532, %534, %cst_139 {dimension_numbers = #tpu.dot_dimension_numbers<[1], [0], [0], [1], [0, 0, 1, 1], [], []>} : vector<8x32xf32>, vector<32x5xf32>, vector<8x5xf32> -> vector<8x5xf32>
    %536 = vector.extract_strided_slice %533 {offsets = [32, 0], sizes = [32, 5], strides = [1, 1]} : vector<96x5xf32> to vector<32x5xf32>
    %cst_140 = arith.constant dense<0.000000e+00> : vector<8x5xf32>
    %537 = tpu.matmul %524, %536, %cst_140 {dimension_numbers = #tpu.dot_dimension_numbers<[1], [0], [0], [1], [0, 0, 1, 1], [], []>} : vector<8x32xf32>, vector<32x5xf32>, vector<8x5xf32> -> vector<8x5xf32>
    %538 = arith.addf %535, %537 : vector<8x5xf32>
    %539 = vector.extract_strided_slice %533 {offsets = [64, 0], sizes = [32, 5], strides = [1, 1]} : vector<96x5xf32> to vector<32x5xf32>
    %cst_141 = arith.constant dense<0.000000e+00> : vector<8x5xf32>
    %540 = tpu.matmul %527, %539, %cst_141 {dimension_numbers = #tpu.dot_dimension_numbers<[1], [0], [0], [1], [0, 0, 1, 1], [], []>} : vector<8x32xf32>, vector<32x5xf32>, vector<8x5xf32> -> vector<8x5xf32>
    %541 = arith.addf %538, %540 : vector<8x5xf32>
    %c0_142 = arith.constant 0 : index
    %c0_143 = arith.constant 0 : index
    %542 = vector.load %arg8[%c0_142, %c0_143] : memref<1x5xf32, #tpu.memory_space<vmem>>, vector<1x5xf32>
    %543 = vector.broadcast %542 : vector<1x5xf32> to vector<8x5xf32>
    %544 = arith.addf %541, %543 : vector<8x5xf32>
    %c0_144 = arith.constant 0 : index
    %c0_145 = arith.constant 0 : index
    %545 = vector.load %arg9[%c0_144, %c0_145] : memref<8x5xf32, #tpu.memory_space<vmem>>, vector<8x5xf32>
    tpu.vector_store %arg9[%c0_144, %c0_145], %544 {strides = array<i32>} : memref<8x5xf32, #tpu.memory_space<vmem>>, vector<8x5xf32>,
    return
  }
  func.func @transform_0(%arg0: i32) -> (i32, i32) {
    %c0_i32 = arith.constant 0 : i32
    %c0_i32_0 = arith.constant 0 : i32
    return %c0_i32, %arg0 : i32, i32
  }
  func.func @transform_1(%arg0: i32) -> (i32, i32) {
    %c0_i32 = arith.constant 0 : i32
    %c0_i32_0 = arith.constant 0 : i32
    return %arg0, %c0_i32 : i32, i32
  }
  func.func @transform_2(%arg0: i32) -> (i32, i32) {
    %c0_i32 = arith.constant 0 : i32
    %c0_i32_0 = arith.constant 0 : i32
    %c0_i32_1 = arith.constant 0 : i32
    return %c0_i32, %c0_i32_0 : i32, i32
  }
  func.func @transform_3(%arg0: i32) -> (i32, i32, i32) {
    %c0_i32 = arith.constant 0 : i32
    %c0_i32_0 = arith.constant 0 : i32
    %c0_i32_1 = arith.constant 0 : i32
    %c0_i32_2 = arith.constant 0 : i32
    return %c0_i32, %c0_i32_0, %c0_i32_1 : i32, i32, i32
  }
  func.func @transform_4(%arg0: i32) -> (i32, i32, i32) {
    %c0_i32 = arith.constant 0 : i32
    %c0_i32_0 = arith.constant 0 : i32
    %c0_i32_1 = arith.constant 0 : i32
    %c0_i32_2 = arith.constant 0 : i32
    return %c0_i32, %c0_i32_0, %c0_i32_1 : i32, i32, i32
  }
  func.func @transform_5(%arg0: i32) -> (i32, i32, i32) {
    %c0_i32 = arith.constant 0 : i32
    %c0_i32_0 = arith.constant 0 : i32
    %c0_i32_1 = arith.constant 0 : i32
    %c0_i32_2 = arith.constant 0 : i32
    return %c0_i32, %c0_i32_0, %c0_i32_1 : i32, i32, i32
  }
  func.func @transform_6(%arg0: i32) -> (i32, i32) {
    %c0_i32 = arith.constant 0 : i32
    %c0_i32_0 = arith.constant 0 : i32
    %c0_i32_1 = arith.constant 0 : i32
    return %c0_i32, %c0_i32_0 : i32, i32
  }
  func.func @transform_7(%arg0: i32) -> (i32, i32) {
    %c0_i32 = arith.constant 0 : i32
    %c0_i32_0 = arith.constant 0 : i32
    %c0_i32_1 = arith.constant 0 : i32
    return %c0_i32, %c0_i32_0 : i32, i32
  }
  func.func @transform_8(%arg0: i32) -> (i32, i32) {
    %c0_i32 = arith.constant 0 : i32
    %c0_i32_0 = arith.constant 0 : i32
    return %arg0, %c0_i32 : i32, i32
  }
}

</mosaic_0001>

<bundles_post_ra>
// kernel: tpu_custom_call.1
= control target key start
LH: loop header
LB: loop body
LE: loop exit
PB: predicated region body
PF: predicated region fallthrough
CT: control target
= control target key end

     0   :  { %13 = vsyncpa [#allocation5], 0  ;;  %s2292_s0 = inlined_call_operand.vmem [shape: f32[8,8], index: 0, kind: input, shape index: {}]   ;;  %s2293_s1 = inlined_call_operand.vmem [shape: s32[8,1], index: 1, kind: input, shape index: {}]   ;;  %s2294_s2 = inlined_call_operand.vmem [shape: f32[1,128], index: 2, kind: input, shape index: {}]   ;;  %s2295_s3 = inlined_call_operand.vmem [shape: f32[2,1,128], index: 3, kind: input, shape index: {}]   ;;  %s2296_s4 = inlined_call_operand.vmem [shape: f32[2,32,128], index: 4, kind: input, shape index: {}]   ;;  %s2297_s5 = inlined_call_operand.hbm [shape: f32[2,32,128], index: 5, kind: input, shape index: {}]   ;;  %s2298_s6 = inlined_call_operand.vmem [shape: f32[96,5], index: 6, kind: input, shape index: {}]   ;;  %s2299_s7 = inlined_call_operand.vmem [shape: f32[1,5], index: 7, kind: input, shape index: {}]   ;;  %s2300_s8 = inlined_call_operand.hbm [shape: f32[8,5], index: 8, kind: output, shape index: {}]  }
   0x1   :  { %14 = vsyncpa [#allocation6], 0  ;;  %s29_s29 = sshll.u32 %s2297_s5, 4  ;;  %s1809_s30 = smov [#allocation4]   ;;  %s30_s29 = int_to_ptr.hbm [resolvable:$true] %s29_s29 }
   0x2   :  { %s31_s9 = sshll.u32 %s1809_s30, 4  ;;  %s1810_s10 = smov 128   ;;  %s32_s9 = int_to_ptr.vmem [resolvable:$true] %s31_s9 }
   0x3   :  { %s1811_s11 = smov 8  }
   0x4   :  { %37 = dma.hbm_to_vmem [thread:$0]  %s30_s29, 1024, %s32_s9, [#allocation5], %s1810_s10, %s1810_s10, %s1811_s11  }
   0x5   :  { %1805 = dma.done.wait [#allocation5], 1024  }
   0x6   :  { %1806 = vsyncadd [#allocation5], 4294966272  ;;  %v49_v0 = vlaneseq  ;;  %v1865_v2 = vld [vmem:[#allocation4 + $0x18] sm:$0xff]  ;;  %v1867_v3 = vld [vmem:[#allocation4 + $0x10] sm:$0xff]  ;;  %v1812_v8 = vmov 0.0   ;;  %s1813_s16 = smov 64  }
   0x7   :  { %157 = vmatpush.msra.mxu0 %v1865_v2  ;;  %v1873_v4 = vld [vmem:[%s2292_s0] sm:$0xff]  ;;  %224 = vmatpush.msra.mxu1 %v1865_v2  ;;  %v1876_v5 = vld [vmem:[#allocation4 + $0x8] sm:$0xff]  ;;  %vm141_vm4 = vcmask 261120   ;;  %s1548_s27 = sshll.u32 %s2300_s8, 4  ;;  %s1549_s27 = int_to_ptr.hbm [resolvable:$true] %s1548_s27 }
   0x8   :  { %v50_v1 = vshrl.u32 %v49_v0, 7  ;;  %v48_v6 = vperm.slane %v1873_v4, 0  ;;  %292 = vmatpush.msra.mxu2 %v1865_v2  ;;  %632 = vmatpush.msra.mxu3 %v1865_v2  ;;  %v1883_v7 = vld [vmem:[#allocation4] sm:$0xff]  ;;  %v55_v38 = vperm.slane %v1873_v4, 1 }
   0x9   :  { %158 = vmatpush.msra.mxu0 %v1867_v3  ;;  %225 = vmatpush.msra.mxu1 %v1867_v3  ;;  %v1911_v9 = vld [vmem:[%s2294_s2] ss:$0 sm:$0xff]  ;;  %s1814_s2 = smov 32  }
   0xa   :  { %1617 = vset.pattern.permute.xlu0 %v50_v1  ;;  %1618 = vset.pattern.permute.xlu2 %v50_v1  ;;  %v1917_v12 = vld [vmem:[%s2295_s3] ss:$0 sm:$0xff] }
   0xb   :  { %1619 = vset.pattern.permute.xlu1 %v50_v1  ;;  %293 = vmatpush.msra.mxu2 %v1867_v3 }
   0xc   :  { %633 = vmatpush.msra.mxu3 %v1867_v3  ;;  %159 = vmatpush.msra.mxu0 %v1876_v5 }
   0xd   :  { %226 = vmatpush.msra.mxu1 %v1876_v5  ;;  %294 = vmatpush.msra.mxu2 %v1876_v5 }
   0xe   :  { %160 = vmatpush.msra.mxu0 %v1883_v7  ;;  %634 = vmatpush.msra.mxu3 %v1876_v5 }
   0xf   :  { %161 = vmatmul.f32.vlgmr.msra.gmra.mxu0 %v1812_v8  ;;  %227 = vmatpush.msra.mxu1 %v1883_v7 }
  0x10   :  { %295 = vmatpush.msra.mxu2 %v1883_v7  ;;  %428 = vmatpush.msrb.mxu0 %v1865_v2 }
  0x11   :  { %360 = vmatpush.msrb.mxu1 %v1865_v2  ;;  %635 = vmatpush.msra.mxu3 %v1883_v7 }
  0x12   :  { %53 = vperm.xlu0 %1617, %v48_v6   ;;  %564 = vmatpush.msrb.mxu2 %v1865_v2 }
  0x13   :  { %361 = vmatpush.msrb.mxu1 %v1867_v3  ;;  %429 = vmatpush.msrb.mxu0 %v1867_v3 }
  0x14   :  { %565 = vmatpush.msrb.mxu2 %v1867_v3 }
  0x15   :  { %362 = vmatpush.msrb.mxu1 %v1876_v5  ;;  %430 = vmatpush.msrb.mxu0 %v1876_v5 }
  0x16   :  { %566 = vmatpush.msrb.mxu2 %v1876_v5 }
  0x17   :  { %363 = vmatpush.msrb.mxu1 %v1883_v7  ;;  %431 = vmatpush.msrb.mxu0 %v1883_v7 }
  0x18   :  { %567 = vmatpush.msrb.mxu2 %v1883_v7 }
  0x84   :  { %v54_v10 = vpop.permute.xlu0 %53 }
  0x85   :  { %v108_v11 = vmul.f32 %v1911_v9, %v54_v10 }
  0x87   :  { %v120_v13 = vadd.f32 %v1917_v12, %v108_v11 }
  0x8c   :  { %v162_v14 = vpop.f32.mrf.mxu0 }
  0x8d   :  { %v165_v15 = vadd.f32 %v162_v14, %v120_v13 }
  0x8f   :  { %1627 = vtanh.f32 %v165_v15  ;;  %v1558_v17 = vmul.f32 -1.442695, %v165_v15 }
  0x91   :  { %1629 = vpow2.f32 %v1558_v17 }
  0x95   :  { %v1628_v16 = vpop.eup %1627 }
  0x96   :  { %188 = vrot.lane.b32.xlu0 %v1628_v16, %s1813_s16 }
  0x97   :  { %v1630_v18 = vpop.eup %1629 }
  0x98   :  { %v169_v19 = vadd.f32 1.0, %v1630_v18 }
  0x9a   :  { %1631 = vrcp.f32 %v169_v19  ;;  %v181_v25 = vand.u32 2147483648, %v169_v19  ;;  %vm175_vm1 = vweird.f32 %v169_v19  ;;  %v179_v26 = vand.u32 2147483647, %v169_v19 }
  0x9c   :  { %v182_v28 = vor.u32 1.1754944e-38, %v181_v25  ;;  %vm180_vm3 = vcmp.eq.f32.partialorder %v179_v26, 8.507059e+37 }
  0xa0   :  { %v1632_v20 = vpop.eup %1631 }
  0xa1   :  { %v171_v21 = vmul.f32 %v1632_v20, %v169_v19  ;;  %vm176_vm0 = vweird.f32 %v1632_v20 }
  0xa2   :  { %vm177_vm2 = vmor %vm175_vm1, %vm176_vm0 }
  0xa3   :  { %v172_v22 = vsub.f32 1.0, %v171_v21 }
  0xa5   :  { %v173_v23 = vmul.f32 %v1632_v20, %v172_v22 }
  0xa7   :  { %v174_v24 = vadd.f32 %v1632_v20, %v173_v23 }
  0xa9   :  { %v178_v27 = vsel %vm177_vm2, %v1632_v20, %v174_v24 }
  0xaa   :  { %v183_v30 = vsel %vm180_vm3, %v182_v28, %v178_v27 }
  0xab   :  { %v186_v32 = vmul.f32 0.0, %v183_v30 }
 0x108   :  { %v189_v29 = vpop.permute.xlu0 %188 }
 0x109   :  { %v191_v31 = vmul.f32 %v189_v29, %v183_v30 }
 0x10b   :  { %193 = vrot.lane.b32.xlu1 %v191_v31, %s1814_s2 }
 0x17d   :  { %v194_v33 = vpop.permute.xlu1 %193 }
 0x17e   :  { %v196_v34 = vadd.f32 %v194_v33, %v186_v32 }
 0x180   :  { %1633 = vtanh.f32 %v196_v34 }
 0x186   :  { %v1634_v35 = vpop.eup %1633 }
 0x187   :  { %199 = vrot.lane.b32.xlu1 %v1634_v35, %s1813_s16 }
 0x1f9   :  { %v200_v36 = vpop.permute.xlu1 %199 }
 0x1fa   :  { %v202_v37 = vmul.f32 %v200_v36, %v183_v30  ;;  %v69_v30 = vperm.slane %v1873_v4, 3 }
 0x1fc   :  { %204 = vrot.lane.b32.xlu2 %v202_v37, %s1814_s2 }
 0x204   :  { %60 = vperm.xlu2 %1618, %v55_v38  }
 0x256   :  { %v205_v39 = vpop.permute.xlu2 %204 }
 0x257   :  { %207 = vst.msk [vmem:[#allocation3] sm:$0xff] %vm141_vm4, %v205_v39  ;;  %1559 = vmatmul.msk.f32.vlgmr.msra.gmra.mxu1 %vm141_vm4, %v205_v39 }
 0x258   :  { %496 = vmatpush.msra.mxu1 %v1865_v2 }
 0x25a   :  { %497 = vmatpush.msra.mxu1 %v1867_v3  ;;  %v62_v3 = vperm.slane %v1873_v4, 2 }
 0x25c   :  { %498 = vmatpush.msra.mxu1 %v1876_v5 }
 0x25e   :  { %499 = vmatpush.msra.mxu1 %v1883_v7  ;;  %v61_v40 = vpop.permute.xlu2 %60 }
 0x25f   :  { %v109_v41 = vmul.f32 %v1911_v9, %v61_v40 }
 0x261   :  { %v121_v42 = vadd.f32 %v1917_v12, %v109_v41 }
 0x2d4   :  { %v229_v43 = vpop.f32.mrf.mxu1 }
 0x2d5   :  { %v232_v44 = vadd.f32 %v229_v43, %v121_v42 }
 0x2d7   :  { %1635 = vtanh.f32 %v232_v44  ;;  %v1560_v46 = vmul.f32 -1.442695, %v232_v44 }
 0x2d9   :  { %1637 = vpow2.f32 %v1560_v46 }
 0x2dd   :  { %v1636_v45 = vpop.eup %1635 }
 0x2de   :  { %255 = vrot.lane.b32.xlu0 %v1636_v45, %s1813_s16 }
 0x2df   :  { %v1638_v47 = vpop.eup %1637 }
 0x2e0   :  { %v236_v48 = vadd.f32 1.0, %v1638_v47 }
 0x2e2   :  { %1639 = vrcp.f32 %v236_v48  ;;  %v248_v54 = vand.u32 2147483648, %v236_v48  ;;  %vm242_vm6 = vweird.f32 %v236_v48  ;;  %v246_v55 = vand.u32 2147483647, %v236_v48 }
 0x2e4   :  { %v249_v57 = vor.u32 1.1754944e-38, %v248_v54  ;;  %vm247_vm8 = vcmp.eq.f32.partialorder %v246_v55, 8.507059e+37 }
 0x2e8   :  { %v1640_v49 = vpop.eup %1639 }
 0x2e9   :  { %v238_v50 = vmul.f32 %v1640_v49, %v236_v48  ;;  %vm243_vm5 = vweird.f32 %v1640_v49 }
 0x2ea   :  { %vm244_vm7 = vmor %vm242_vm6, %vm243_vm5 }
 0x2eb   :  { %v239_v51 = vsub.f32 1.0, %v238_v50 }
 0x2ed   :  { %v240_v52 = vmul.f32 %v1640_v49, %v239_v51 }
 0x2ef   :  { %v241_v53 = vadd.f32 %v1640_v49, %v240_v52 }
 0x2f1   :  { %v245_v56 = vsel %vm244_vm7, %v1640_v49, %v241_v53 }
 0x2f2   :  { %v250_v59 = vsel %vm247_vm8, %v249_v57, %v245_v56 }
 0x2f3   :  { %v253_v61 = vmul.f32 %v250_v59, %v196_v34 }
 0x350   :  { %v256_v58 = vpop.permute.xlu0 %255 }
 0x351   :  { %v258_v60 = vmul.f32 %v256_v58, %v250_v59 }
 0x353   :  { %260 = vrot.lane.b32.xlu1 %v258_v60, %s1814_s2 }
 0x35b   :  { %67 = vperm.xlu1 %1619, %v62_v3   ;;  %v1575_v3 = vld [vmem:[%s2296_s4 + $0x30] sm:$0xff] }
 0x3c5   :  { %v261_v62 = vpop.permute.xlu1 %260 }
 0x3c6   :  { %v263_v63 = vadd.f32 %v261_v62, %v253_v61 }
 0x3c8   :  { %1641 = vtanh.f32 %v263_v63 }
 0x3cd   :  { %v68_v6 = vpop.permute.xlu1 %67 }
 0x3ce   :  { %v1642_v0 = vpop.eup %1641  ;;  %v110_v7 = vmul.f32 %v1911_v9, %v68_v6  ;;  %v1573_v6 = vld [vmem:[%s2296_s4 + $0x20] sm:$0xff] }
 0x3cf   :  { %266 = vrot.lane.b32.xlu2 %v1642_v0, %s1813_s16 }
 0x3d0   :  { %v122_v10 = vadd.f32 %v1917_v12, %v110_v7 }
 0x429   :  { %v267_v1 = vpop.permute.xlu2 %266 }
 0x42a   :  { %v269_v2 = vmul.f32 %v267_v1, %v250_v59  ;;  %v76_v59 = vperm.slane %v1873_v4, 4 }
 0x42c   :  { %271 = vrot.lane.b32.xlu0 %v269_v2, %s1814_s2  ;;  %v1576_v2 = vld [vmem:[%s2296_s4 + $0x38] sm:$0xff] }
 0x42d   :  { %743 = vmatpush.msra.mxu0 %v1576_v2  ;;  %1605 = vmatpush.msrb.mxu3 %v1576_v2 }
 0x42f   :  { %744 = vmatpush.msra.mxu0 %v1575_v3  ;;  %1606 = vmatpush.msrb.mxu3 %v1575_v3 }
 0x49e   :  { %v272_v5 = vpop.permute.xlu0 %271 }
 0x49f   :  { %275 = vst.msk [vmem:[#allocation3 + $0x8] sm:$0xff] %vm141_vm4, %v272_v5  ;;  %1561 = vmatmul.msk.f32.vlgmr.msra.gmra.mxu2 %vm141_vm4, %v272_v5  ;;  %v1574_v5 = vld [vmem:[%s2296_s4 + $0x28] sm:$0xff] }
 0x4a0   :  { %745 = vmatpush.msra.mxu0 %v1574_v5  ;;  %1607 = vmatpush.msrb.mxu3 %v1574_v5 }
 0x4a2   :  { %746 = vmatpush.msra.mxu0 %v1573_v6  ;;  %1608 = vmatpush.msrb.mxu3 %v1573_v6  ;;  %v90_v6 = vperm.slane %v1873_v4, 6 }
 0x522   :  { %v297_v11 = vpop.f32.mrf.mxu2 }
 0x523   :  { %v300_v13 = vadd.f32 %v297_v11, %v122_v10  ;;  %v689_v10 = vld [vmem:[#allocation3] sm:$0xff]  ;;  %v690_v11 = vld [vmem:[#allocation3 + $0x8] sm:$0xff] }
 0x525   :  { %1643 = vtanh.f32 %v300_v13  ;;  %v1562_v15 = vmul.f32 -1.442695, %v300_v13 }
 0x527   :  { %1645 = vpow2.f32 %v1562_v15 }
 0x52b   :  { %v1644_v14 = vpop.eup %1643 }
 0x52c   :  { %323 = vrot.lane.b32.xlu2 %v1644_v14, %s1813_s16 }
 0x52d   :  { %v1646_v16 = vpop.eup %1645 }
 0x52e   :  { %v304_v17 = vadd.f32 1.0, %v1646_v16 }
 0x530   :  { %1647 = vrcp.f32 %v304_v17  ;;  %v316_v23 = vand.u32 2147483648, %v304_v17  ;;  %vm310_vm10 = vweird.f32 %v304_v17  ;;  %v314_v24 = vand.u32 2147483647, %v304_v17 }
 0x532   :  { %v317_v26 = vor.u32 1.1754944e-38, %v316_v23  ;;  %vm315_vm12 = vcmp.eq.f32.partialorder %v314_v24, 8.507059e+37 }
 0x536   :  { %v1648_v18 = vpop.eup %1647 }
 0x537   :  { %v306_v19 = vmul.f32 %v1648_v18, %v304_v17  ;;  %vm311_vm9 = vweird.f32 %v1648_v18 }
 0x538   :  { %vm312_vm11 = vmor %vm310_vm10, %vm311_vm9 }
 0x539   :  { %v307_v20 = vsub.f32 1.0, %v306_v19 }
 0x53b   :  { %v308_v21 = vmul.f32 %v1648_v18, %v307_v20 }
 0x53d   :  { %v309_v22 = vadd.f32 %v1648_v18, %v308_v21 }
 0x53f   :  { %v313_v25 = vsel %vm312_vm11, %v1648_v18, %v309_v22 }
 0x540   :  { %v318_v28 = vsel %vm315_vm12, %v317_v26, %v313_v25 }
 0x541   :  { %v321_v31 = vmul.f32 %v318_v28, %v263_v63 }
 0x586   :  { %v324_v27 = vpop.permute.xlu2 %323 }
 0x587   :  { %v326_v29 = vmul.f32 %v324_v27, %v318_v28 }
 0x589   :  { %328 = vrot.lane.b32.xlu0 %v326_v29, %s1814_s2 }
 0x591   :  { %74 = vperm.xlu0 %1617, %v69_v30  }
 0x5fb   :  { %v329_v32 = vpop.permute.xlu0 %328 }
 0x5fc   :  { %v331_v33 = vadd.f32 %v329_v32, %v321_v31 }
 0x5fe   :  { %1649 = vtanh.f32 %v331_v33 }
 0x603   :  { %v75_v38 = vpop.permute.xlu0 %74 }
 0x604   :  { %v1650_v34 = vpop.eup %1649  ;;  %v111_v39 = vmul.f32 %v1911_v9, %v75_v38 }
 0x605   :  { %334 = vrot.lane.b32.xlu1 %v1650_v34, %s1813_s16 }
 0x606   :  { %v123_v40 = vadd.f32 %v1917_v12, %v111_v39 }
 0x677   :  { %v335_v35 = vpop.permute.xlu1 %334 }
 0x678   :  { %v337_v36 = vmul.f32 %v335_v35, %v318_v28 }
 0x67a   :  { %339 = vrot.lane.b32.xlu2 %v337_v36, %s1814_s2  ;;  %v83_v36 = vperm.slane %v1873_v4, 5 }
 0x6d4   :  { %v340_v37 = vpop.permute.xlu2 %339 }
 0x6d5   :  { %343 = vst.msk [vmem:[#allocation3 + $0x10] sm:$0xff] %vm141_vm4, %v340_v37  ;;  %1563 = vmatmul.msk.f32.vlgmr.msrb.gmra.mxu1 %vm141_vm4, %v340_v37 }
 0x6dc   :  { %v691_v13 = vld [vmem:[#allocation3 + $0x10] sm:$0xff] }
 0x752   :  { %v365_v41 = vpop.f32.mrf.mxu1 }
 0x753   :  { %v368_v42 = vadd.f32 %v365_v41, %v123_v40 }
 0x755   :  { %1651 = vtanh.f32 %v368_v42  ;;  %v1564_v44 = vmul.f32 -1.442695, %v368_v42 }
 0x757   :  { %1653 = vpow2.f32 %v1564_v44  ;;  %v1986_v44 = vld [vmem:[#allocation4 + $0x30] sm:$0xff] }
 0x75b   :  { %v1652_v43 = vpop.eup %1651 }
 0x75c   :  { %391 = vrot.lane.b32.xlu1 %v1652_v43, %s1813_s16  ;;  %v1984_v43 = vld [vmem:[#allocation4 + $0x38] sm:$0xff] }
 0x75d   :  { %v1654_v45 = vpop.eup %1653  ;;  %793 = vmatpush.msrb.mxu1 %v1984_v43  ;;  %874 = vmatpush.msra.mxu2 %v1984_v43 }
 0x75e   :  { %v372_v46 = vadd.f32 1.0, %v1654_v45  ;;  %v1990_v45 = vld [vmem:[#allocation4 + $0x28] sm:$0xff] }
 0x75f   :  { %794 = vmatpush.msrb.mxu1 %v1986_v44  ;;  %875 = vmatpush.msra.mxu2 %v1986_v44 }
 0x760   :  { %1655 = vrcp.f32 %v372_v46  ;;  %v384_v52 = vand.u32 2147483648, %v372_v46  ;;  %vm378_vm14 = vweird.f32 %v372_v46  ;;  %v382_v53 = vand.u32 2147483647, %v372_v46 }
 0x761   :  { %795 = vmatpush.msrb.mxu1 %v1990_v45  ;;  %876 = vmatpush.msra.mxu2 %v1990_v45 }
 0x762   :  { %v385_v55 = vor.u32 1.1754944e-38, %v384_v52  ;;  %vm383_vm0 = vcmp.eq.f32.partialorder %v382_v53, 8.507059e+37 }
 0x766   :  { %v1656_v47 = vpop.eup %1655 }
 0x767   :  { %v374_v48 = vmul.f32 %v1656_v47, %v372_v46  ;;  %vm379_vm13 = vweird.f32 %v1656_v47  ;;  %v1994_v46 = vld [vmem:[#allocation4 + $0x20] sm:$0xff] }
 0x768   :  { %vm380_vm15 = vmor %vm378_vm14, %vm379_vm13  ;;  %796 = vmatpush.msrb.mxu1 %v1994_v46  ;;  %877 = vmatpush.msra.mxu2 %v1994_v46 }
 0x769   :  { %v375_v49 = vsub.f32 1.0, %v374_v48 }
 0x76b   :  { %v376_v50 = vmul.f32 %v1656_v47, %v375_v49 }
 0x76d   :  { %v377_v51 = vadd.f32 %v1656_v47, %v376_v50 }
 0x76f   :  { %v381_v54 = vsel %vm380_vm15, %v1656_v47, %v377_v51 }
 0x770   :  { %v386_v57 = vsel %vm383_vm0, %v385_v55, %v381_v54 }
 0x771   :  { %v389_v60 = vmul.f32 %v386_v57, %v331_v33 }
 0x7ce   :  { %v392_v56 = vpop.permute.xlu1 %391 }
 0x7cf   :  { %v394_v58 = vmul.f32 %v392_v56, %v386_v57 }
 0x7d1   :  { %396 = vrot.lane.b32.xlu2 %v394_v58, %s1814_s2 }
 0x7d9   :  { %81 = vperm.xlu2 %1618, %v76_v59  }
 0x82b   :  { %v397_v61 = vpop.permute.xlu2 %396 }
 0x82c   :  { %v399_v62 = vadd.f32 %v397_v61, %v389_v60 }
 0x82e   :  { %1657 = vtanh.f32 %v399_v62 }
 0x833   :  { %v82_v15 = vpop.permute.xlu2 %81 }
 0x834   :  { %v1658_v63 = vpop.eup %1657  ;;  %v112_v16 = vmul.f32 %v1911_v9, %v82_v15 }
 0x835   :  { %402 = vrot.lane.b32.xlu0 %v1658_v63, %s1813_s16 }
 0x836   :  { %v124_v17 = vadd.f32 %v1917_v12, %v112_v16 }
 0x8a7   :  { %v403_v0 = vpop.permute.xlu0 %402 }
 0x8a8   :  { %v405_v1 = vmul.f32 %v403_v0, %v386_v57 }
 0x8aa   :  { %407 = vrot.lane.b32.xlu1 %v405_v1, %s1814_s2 }
 0x91c   :  { %v408_v7 = vpop.permute.xlu1 %407 }
 0x91d   :  { %411 = vst.msk [vmem:[#allocation3 + $0x18] sm:$0xff] %vm141_vm4, %v408_v7  ;;  %1565 = vmatmul.msk.f32.vlgmr.msrb.gmra.mxu0 %vm141_vm4, %v408_v7 }
 0x924   :  { %v692_v14 = vld [vmem:[#allocation3 + $0x18] sm:$0xff] }
 0x925   :  { %1578 = vmatmul.msk.f32.vlgmr.msra.gmra.mxu0 %vm141_vm4, %v689_v10 }
 0x92d   :  { %1579 = vmatmul.msk.f32.gmra.mxu0 %vm141_vm4, %v690_v11 }
 0x935   :  { %1580 = vmatmul.msk.f32.gmra.mxu0 %vm141_vm4, %v691_v13 }
 0x93d   :  { %1581 = vmatmul.msk.f32.gmra.mxu0 %vm141_vm4, %v692_v14  ;;  %v2025_v14 = vld [vmem:[%s2295_s3 + $0x1] ss:$0 sm:$0xff]  ;;  %s1816_s3 = smov [#allocation7]  }
 0x99a   :  { %v433_v18 = vpop.f32.mrf.mxu0 }
 0x99b   :  { %v436_v19 = vadd.f32 %v433_v18, %v124_v17 }
 0x99d   :  { %1659 = vtanh.f32 %v436_v19  ;;  %v1566_v21 = vmul.f32 -1.442695, %v436_v19 }
 0x99f   :  { %1661 = vpow2.f32 %v1566_v21 }
 0x9a2   :  { %v748_v15 = vpop.f32.mrf.mxu0 }
 0x9a3   :  { %v1660_v20 = vpop.eup %1659  ;;  %v749_v17 = vadd.f32 %v2025_v14, %v748_v15 }
 0x9a4   :  { %459 = vrot.lane.b32.xlu0 %v1660_v20, %s1813_s16 }
 0x9a5   :  { %v1662_v22 = vpop.eup %1661 }
 0x9a6   :  { %v440_v23 = vadd.f32 1.0, %v1662_v22 }
 0x9a8   :  { %1663 = vrcp.f32 %v440_v23  ;;  %v452_v29 = vand.u32 2147483648, %v440_v23  ;;  %vm446_vm2 = vweird.f32 %v440_v23  ;;  %v450_v30 = vand.u32 2147483647, %v440_v23 }
 0x9aa   :  { %v453_v32 = vor.u32 1.1754944e-38, %v452_v29  ;;  %vm451_vm5 = vcmp.eq.f32.partialorder %v450_v30, 8.507059e+37 }
 0x9ae   :  { %v1664_v24 = vpop.eup %1663 }
 0x9af   :  { %v442_v25 = vmul.f32 %v1664_v24, %v440_v23  ;;  %vm447_vm1 = vweird.f32 %v1664_v24 }
 0x9b0   :  { %vm448_vm3 = vmor %vm446_vm2, %vm447_vm1 }
 0x9b1   :  { %v443_v26 = vsub.f32 1.0, %v442_v25 }
 0x9b3   :  { %v444_v27 = vmul.f32 %v1664_v24, %v443_v26 }
 0x9b5   :  { %v445_v28 = vadd.f32 %v1664_v24, %v444_v27 }
 0x9b7   :  { %v449_v31 = vsel %vm448_vm3, %v1664_v24, %v445_v28 }
 0x9b8   :  { %v454_v34 = vsel %vm451_vm5, %v453_v32, %v449_v31 }
 0x9b9   :  { %v457_v37 = vmul.f32 %v454_v34, %v399_v62 }
 0xa16   :  { %v460_v33 = vpop.permute.xlu0 %459 }
 0xa17   :  { %v462_v35 = vmul.f32 %v460_v33, %v454_v34 }
 0xa19   :  { %464 = vrot.lane.b32.xlu1 %v462_v35, %s1814_s2 }
 0xa21   :  { %88 = vperm.xlu1 %1619, %v83_v36  }
 0xa8b   :  { %v465_v38 = vpop.permute.xlu1 %464 }
 0xa8c   :  { %v1979_v39 = vadd.f32 %v465_v38, %v457_v37 }
 0xa8e   :  { %1665 = vtanh.f32 %v1979_v39 }
 0xa93   :  { %v89_v49 = vpop.permute.xlu1 %88 }
 0xa94   :  { %v1666_v40 = vpop.eup %1665  ;;  %v113_v50 = vmul.f32 %v1911_v9, %v89_v49 }
 0xa95   :  { %470 = vrot.lane.b32.xlu2 %v1666_v40, %s1813_s16 }
 0xa96   :  { %v125_v51 = vadd.f32 %v1917_v12, %v113_v50 }
 0xaef   :  { %v471_v41 = vpop.permute.xlu2 %470 }
 0xaf0   :  { %v473_v42 = vmul.f32 %v471_v41, %v454_v34 }
 0xaf2   :  { %475 = vrot.lane.b32.xlu0 %v473_v42, %s1814_s2 }
 0xb64   :  { %v476_v47 = vpop.permute.xlu0 %475 }
 0xb65   :  { %479 = vst.msk [vmem:[#allocation3 + $0x20] sm:$0xff] %vm141_vm4, %v476_v47  ;;  %1567 = vmatmul.msk.f32.vlgmr.msra.gmra.mxu1 %vm141_vm4, %v476_v47 }
 0xb66   :  { %1036 = vmatpush.msra.mxu1 %v1984_v43 }
 0xb68   :  { %1037 = vmatpush.msra.mxu1 %v1986_v44 }
 0xb6a   :  { %1038 = vmatpush.msra.mxu1 %v1990_v45 }
 0xb6c   :  { %v693_v48 = vld [vmem:[#allocation3 + $0x20] sm:$0xff]  ;;  %1039 = vmatpush.msra.mxu1 %v1994_v46 }
 0xb6d   :  { %1582 = vmatmul.msk.f32.gmra.mxu0 %vm141_vm4, %v693_v48  ;;  %797 = vmatmul.f32.vlgmr.msrb.gmra.mxu1 %v1812_v8 }
 0xb6e   :  { %1279 = vmatpush.msrb.mxu1 %v1984_v43 }
 0xb70   :  { %1280 = vmatpush.msrb.mxu1 %v1986_v44 }
 0xb72   :  { %1281 = vmatpush.msrb.mxu1 %v1990_v45 }
 0xb74   :  { %1282 = vmatpush.msrb.mxu1 %v1994_v46 }
 0xbe2   :  { %v501_v52 = vpop.f32.mrf.mxu1 }
 0xbe3   :  { %v504_v53 = vadd.f32 %v501_v52, %v125_v51 }
 0xbe5   :  { %1667 = vtanh.f32 %v504_v53  ;;  %v1568_v8 = vmul.f32 -1.442695, %v504_v53 }
 0xbe7   :  { %1669 = vpow2.f32 %v1568_v8 }
 0xbea   :  { %v798_v16 = vpop.f32.mrf.mxu1 }
 0xbeb   :  { %v1668_v54 = vpop.eup %1667  ;;  %v801_v18 = vadd.f32 %v798_v16, %v749_v17 }
 0xbec   :  { %527 = vrot.lane.b32.xlu2 %v1668_v54, %s1813_s16 }
 0xbed   :  { %v1670_v55 = vpop.eup %1669  ;;  %v1586_v23 = vmul.f32 -1.442695, %v801_v18 }
 0xbee   :  { %v508_v56 = vadd.f32 1.0, %v1670_v55 }
 0xbf0   :  { %1671 = vrcp.f32 %v508_v56  ;;  %v520_v62 = vand.u32 2147483648, %v508_v56  ;;  %vm514_vm7 = vweird.f32 %v508_v56  ;;  %v518_v63 = vand.u32 2147483647, %v508_v56 }
 0xbf2   :  { %v521_v1 = vor.u32 1.1754944e-38, %v520_v62  ;;  %vm519_vm9 = vcmp.eq.f32.partialorder %v518_v63, 8.507059e+37 }
 0xbf6   :  { %v1672_v57 = vpop.eup %1671 }
 0xbf7   :  { %v510_v58 = vmul.f32 %v1672_v57, %v508_v56  ;;  %vm515_vm6 = vweird.f32 %v1672_v57 }
 0xbf8   :  { %vm516_vm8 = vmor %vm514_vm7, %vm515_vm6 }
 0xbf9   :  { %v511_v59 = vsub.f32 1.0, %v510_v58 }
 0xbfb   :  { %v512_v60 = vmul.f32 %v1672_v57, %v511_v59 }
 0xbfd   :  { %v513_v61 = vadd.f32 %v1672_v57, %v512_v60 }
 0xbff   :  { %v517_v0 = vsel %vm516_vm8, %v1672_v57, %v513_v61 }
 0xc00   :  { %v522_v3 = vsel %vm519_vm9, %v521_v1, %v517_v0 }
 0xc01   :  { %v525_v7 = vmul.f32 %v522_v3, %v1979_v39 }
 0xc46   :  { %v528_v2 = vpop.permute.xlu2 %527 }
 0xc47   :  { %v530_v5 = vmul.f32 %v528_v2, %v522_v3  ;;  %v97_v2 = vperm.slane %v1873_v4, 7 }
 0xc49   :  { %532 = vrot.lane.b32.xlu0 %v530_v5, %s1814_s2 }
 0xc51   :  { %95 = vperm.xlu0 %1617, %v90_v6  }
 0xcbb   :  { %v533_v10 = vpop.permute.xlu0 %532 }
 0xcbc   :  { %v2018_v11 = vadd.f32 %v533_v10, %v525_v7 }
 0xcbe   :  { %1673 = vtanh.f32 %v2018_v11 }
 0xcbf   :  { %1675 = vtanh.f32 %v801_v18 }
 0xcc0   :  { %1677 = vpow2.f32 %v1586_v23 }
 0xcc3   :  { %v96_v26 = vpop.permute.xlu0 %95 }
 0xcc4   :  { %v1674_v13 = vpop.eup %1673  ;;  %v114_v28 = vmul.f32 %v1911_v9, %v96_v26 }
 0xcc5   :  { %538 = vrot.lane.b32.xlu1 %v1674_v13, %s1813_s16  ;;  %v1676_v21 = vpop.eup %1675 }
 0xcc6   :  { %v1678_v24 = vpop.eup %1677  ;;  %v126_v30 = vadd.f32 %v1917_v12, %v114_v28 }
 0xcc7   :  { %v805_v25 = vadd.f32 1.0, %v1678_v24 }
 0xcc9   :  { %1679 = vrcp.f32 %v805_v25  ;;  %v817_v37 = vand.u32 2147483648, %v805_v25  ;;  %vm811_vm11 = vweird.f32 %v805_v25  ;;  %v815_v38 = vand.u32 2147483647, %v805_v25 }
 0xccb   :  { %v818_v40 = vor.u32 1.1754944e-38, %v817_v37  ;;  %vm816_vm13 = vcmp.eq.f32.partialorder %v815_v38, 8.507059e+37 }
 0xccf   :  { %v1680_v27 = vpop.eup %1679 }
 0xcd0   :  { %v807_v29 = vmul.f32 %v1680_v27, %v805_v25  ;;  %vm812_vm10 = vweird.f32 %v1680_v27 }
 0xcd1   :  { %vm813_vm12 = vmor %vm811_vm11, %vm812_vm10 }
 0xcd2   :  { %v808_v31 = vsub.f32 1.0, %v807_v29 }
 0xcd4   :  { %v809_v34 = vmul.f32 %v1680_v27, %v808_v31 }
 0xcd6   :  { %v810_v35 = vadd.f32 %v1680_v27, %v809_v34 }
 0xcd8   :  { %v814_v39 = vsel %vm813_vm12, %v1680_v27, %v810_v35 }
 0xcd9   :  { %v819_v42 = vsel %vm816_vm13, %v818_v40, %v814_v39 }
 0xcda   :  { %v822_v62 = vmul.f32 0.0, %v819_v42 }
 0xd37   :  { %v539_v19 = vpop.permute.xlu1 %538 }
 0xd38   :  { %v541_v20 = vmul.f32 %v539_v19, %v522_v3  ;;  %v751_v19 = vpop.f32.mrf.mxu0 }
 0xd3a   :  { %543 = vrot.lane.b32.xlu2 %v541_v20, %s1814_s2  ;;  %v752_v20 = vadd.f32 %v2025_v14, %v751_v19 }
 0xd42   :  { %824 = vrot.lane.b32.xlu2 %v1676_v21, %s1813_s16 }
 0xd94   :  { %v544_v22 = vpop.permute.xlu2 %543 }
 0xd95   :  { %547 = vst.msk [vmem:[#allocation3 + $0x28] sm:$0xff] %vm141_vm4, %v544_v22  ;;  %1569 = vmatmul.msk.f32.vlgmr.msrb.gmra.mxu2 %vm141_vm4, %v544_v22 }
 0xd96   :  { %1117 = vmatpush.msrb.mxu2 %v1984_v43 }
 0xd98   :  { %1118 = vmatpush.msrb.mxu2 %v1986_v44 }
 0xd9a   :  { %1119 = vmatpush.msrb.mxu2 %v1990_v45 }
 0xd9c   :  { %1120 = vmatpush.msrb.mxu2 %v1994_v46  ;;  %v825_v41 = vpop.permute.xlu2 %824  ;;  %v694_v17 = vld [vmem:[#allocation3 + $0x28] sm:$0xff] }
 0xd9d   :  { %v827_v47 = vmul.f32 %v825_v41, %v819_v42 }
 0xe18   :  { %v569_v32 = vpop.f32.mrf.mxu2 }
 0xe19   :  { %v572_v33 = vadd.f32 %v569_v32, %v126_v30 }
 0xe1b   :  { %1681 = vtanh.f32 %v572_v33  ;;  %v1570_v48 = vmul.f32 -1.442695, %v572_v33 }
 0xe1d   :  { %1683 = vpow2.f32 %v1570_v48 }
 0xe21   :  { %v1682_v36 = vpop.eup %1681 }
 0xe22   :  { %595 = vrot.lane.b32.xlu1 %v1682_v36, %s1813_s16 }
 0xe23   :  { %v1684_v49 = vpop.eup %1683 }
 0xe24   :  { %v576_v50 = vadd.f32 1.0, %v1684_v49 }
 0xe26   :  { %1685 = vrcp.f32 %v576_v50  ;;  %v588_v55 = vand.u32 2147483648, %v576_v50  ;;  %vm582_vm15 = vweird.f32 %v576_v50  ;;  %v586_v56 = vand.u32 2147483647, %v576_v50 }
 0xe28   :  { %v589_v58 = vor.u32 1.1754944e-38, %v588_v55  ;;  %vm587_vm1 = vcmp.eq.f32.partialorder %v586_v56, 8.507059e+37 }
 0xe2a   :  { %829 = vrot.lane.b32.xlu1 %v827_v47, %s1814_s2 }
 0xe2c   :  { %v1686_v51 = vpop.eup %1685 }
 0xe2d   :  { %v578_v52 = vmul.f32 %v1686_v51, %v576_v50  ;;  %vm583_vm14 = vweird.f32 %v1686_v51 }
 0xe2e   :  { %vm584_vm0 = vmor %vm582_vm15, %vm583_vm14 }
 0xe2f   :  { %v579_v53 = vsub.f32 1.0, %v578_v52 }
 0xe31   :  { %v580_v54 = vmul.f32 %v1686_v51, %v579_v53 }
 0xe33   :  { %v581_v8 = vadd.f32 %v1686_v51, %v580_v54 }
 0xe35   :  { %v585_v57 = vsel %vm584_vm0, %v1686_v51, %v581_v8 }
 0xe36   :  { %v590_v60 = vsel %vm587_vm1, %v589_v58, %v585_v57 }
 0xe37   :  { %v593_v3 = vmul.f32 %v590_v60, %v2018_v11 }
 0xe94   :  { %v596_v59 = vpop.permute.xlu1 %595 }
 0xe95   :  { %v598_v61 = vmul.f32 %v596_v59, %v590_v60 }
 0xe97   :  { %600 = vrot.lane.b32.xlu0 %v598_v61, %s1814_s2 }
 0xe9c   :  { %v830_v63 = vpop.permute.xlu1 %829 }
 0xe9d   :  { %v2041_v0 = vadd.f32 %v830_v63, %v822_v62 }
 0xe9f   :  { %1687 = vtanh.f32 %v2041_v0 }
 0xea5   :  { %v1688_v1 = vpop.eup %1687 }
 0xea6   :  { %835 = vrot.lane.b32.xlu0 %v1688_v1, %s1813_s16 }
 0xeae   :  { %102 = vperm.xlu0 %1617, %v97_v2  }
 0xf09   :  { %v601_v5 = vpop.permute.xlu0 %600 }
 0xf0a   :  { %v2047_v6 = vadd.f32 %v601_v5, %v593_v3 }
 0xf0c   :  { %1689 = vtanh.f32 %v2047_v6 }
 0xf12   :  { %v1690_v7 = vpop.eup %1689 }
 0xf13   :  { %606 = vrot.lane.b32.xlu2 %v1690_v7, %s1813_s16 }
 0xf18   :  { %v836_v10 = vpop.permute.xlu0 %835 }
 0xf19   :  { %v2051_v13 = vmul.f32 %v836_v10, %v819_v42 }
 0xf1b   :  { %858 = vrot.lane.b32.xlu2 %v2051_v13, %s1814_s2 }
 0xf6d   :  { %v607_v15 = vpop.permute.xlu2 %606 }
 0xf6e   :  { %v609_v16 = vmul.f32 %v607_v15, %v590_v60 }
 0xf70   :  { %611 = vrot.lane.b32.xlu1 %v609_v16, %s1814_s2 }
 0xf75   :  { %v859_v4 = vpop.permute.xlu2 %858 }
 0xf76   :  { %1588 = vmatmul.msk.f32.vlgmr.msra.gmra.mxu2 %vm141_vm4, %v859_v4 }
 0xf77   :  { %1360 = vmatpush.msra.mxu2 %v1984_v43 }
 0xf79   :  { %1361 = vmatpush.msra.mxu2 %v1986_v44 }
 0xf7b   :  { %1362 = vmatpush.msra.mxu2 %v1990_v45 }
 0xf7d   :  { %1363 = vmatpush.msra.mxu2 %v1994_v46 }
 0xfe2   :  { %v612_v11 = vpop.permute.xlu1 %611 }
 0xfe3   :  { %615 = vst.msk [vmem:[#allocation3 + $0x30] sm:$0xff] %vm141_vm4, %v612_v11  ;;  %1571 = vmatmul.msk.f32.vlgmr.msra.gmra.mxu3 %vm141_vm4, %v612_v11  ;;  %v754_v11 = vpop.f32.mrf.mxu0 }
 0xfe4   :  { %955 = vmatpush.msra.mxu3 %v1984_v43 }
 0xfe6   :  { %956 = vmatpush.msra.mxu3 %v1986_v44 }
 0xfe8   :  { %957 = vmatpush.msra.mxu3 %v1990_v45 }
 0xfea   :  { %958 = vmatpush.msra.mxu3 %v1994_v46  ;;  %v695_v18 = vld [vmem:[#allocation3 + $0x30] sm:$0xff] }
 0xfeb   :  { %1583 = vmatmul.msk.f32.vlgmr.msrb.gmra.mxu3 %vm141_vm4, %v694_v17  ;;  %v755_v17 = vadd.f32 %v2025_v14, %v754_v11 }
 0xfec   :  { %1198 = vmatpush.msrb.mxu3 %v1984_v43 }
 0xfee   :  { %1199 = vmatpush.msrb.mxu3 %v1986_v44 }
 0xff0   :  { %1200 = vmatpush.msrb.mxu3 %v1990_v45  ;;  %v103_v45 = vpop.permute.xlu0 %102 }
 0xff2   :  { %1201 = vmatpush.msrb.mxu3 %v1994_v46  ;;  %v115_v46 = vmul.f32 %v1911_v9, %v103_v45 }
 0xff3   :  { %1584 = vmatmul.msk.f32.gmra.mxu3 %vm141_vm4, %v695_v18 }
 0xff4   :  { %v127_v27 = vadd.f32 %v1917_v12, %v115_v46 }
 0xff9   :  { %v879_v21 = vpop.f32.mrf.mxu2 }
 0xffa   :  { %v882_v22 = vadd.f32 %v879_v21, %v752_v20 }
 0xffc   :  { %1691 = vtanh.f32 %v882_v22  ;;  %v1589_v24 = vmul.f32 -1.442695, %v882_v22 }
 0xffe   :  { %1693 = vpow2.f32 %v1589_v24 }
0x1002   :  { %v1692_v23 = vpop.eup %1691 }
0x1003   :  { %905 = vrot.lane.b32.xlu2 %v1692_v23, %s1813_s16 }
0x1004   :  { %v1694_v43 = vpop.eup %1693 }
0x1005   :  { %v886_v44 = vadd.f32 1.0, %v1694_v43 }
0x1007   :  { %1695 = vrcp.f32 %v886_v44  ;;  %v898_v34 = vand.u32 2147483648, %v886_v44  ;;  %vm892_vm3 = vweird.f32 %v886_v44  ;;  %v896_v35 = vand.u32 2147483647, %v886_v44 }
0x1009   :  { %v899_v9 = vor.u32 1.1754944e-38, %v898_v34  ;;  %vm897_vm6 = vcmp.eq.f32.partialorder %v896_v35, 8.507059e+37 }
0x100d   :  { %v1696_v25 = vpop.eup %1695 }
0x100e   :  { %v888_v26 = vmul.f32 %v1696_v25, %v886_v44  ;;  %vm893_vm2 = vweird.f32 %v1696_v25 }
0x100f   :  { %vm894_vm5 = vmor %vm892_vm3, %vm893_vm2 }
0x1010   :  { %v889_v28 = vsub.f32 1.0, %v888_v26 }
0x1012   :  { %v890_v31 = vmul.f32 %v1696_v25, %v889_v28 }
0x1014   :  { %v891_v32 = vadd.f32 %v1696_v25, %v890_v31 }
0x1016   :  { %v895_v36 = vsel %vm894_vm5, %v1696_v25, %v891_v32 }
0x1017   :  { %v900_v38 = vsel %vm897_vm6, %v899_v9, %v895_v36 }
0x1018   :  { %v903_v57 = vmul.f32 %v900_v38, %v2041_v0 }
0x105d   :  { %v906_v37 = vpop.permute.xlu2 %905 }
0x105e   :  { %v908_v12 = vmul.f32 %v906_v37, %v900_v38 }
0x1066   :  { %v637_v29 = vpop.f32.mrf.mxu3 }
0x1067   :  { %v640_v30 = vadd.f32 %v637_v29, %v127_v27 }
0x1069   :  { %1697 = vtanh.f32 %v640_v30  ;;  %v1572_v39 = vmul.f32 -1.442695, %v640_v30 }
0x106b   :  { %1699 = vpow2.f32 %v1572_v39 }
0x106e   :  { %v2092_v15 = vpop.f32.mrf.mxu3 }
0x106f   :  { %v1698_v33 = vpop.eup %1697 }
0x1070   :  { %663 = vrot.lane.b32.xlu1 %v1698_v33, %s1813_s16 }
0x1071   :  { %v1700_v40 = vpop.eup %1699 }
0x1072   :  { %v644_v41 = vadd.f32 1.0, %v1700_v40 }
0x1074   :  { %1701 = vrcp.f32 %v644_v41  ;;  %v656_v51 = vand.u32 2147483648, %v644_v41  ;;  %vm650_vm8 = vweird.f32 %v644_v41  ;;  %v654_v52 = vand.u32 2147483647, %v644_v41 }
0x1076   :  { %v657_v54 = vor.u32 1.1754944e-38, %v656_v51  ;;  %vm655_vm10 = vcmp.eq.f32.partialorder %v654_v52, 8.507059e+37  ;;  %v2094_v16 = vpop.f32.mrf.mxu3 }
0x1078   :  { %910 = vrot.lane.b32.xlu1 %v908_v12, %s1814_s2 }
0x107a   :  { %v1702_v42 = vpop.eup %1701 }
0x107b   :  { %v646_v47 = vmul.f32 %v1702_v42, %v644_v41  ;;  %vm651_vm7 = vweird.f32 %v1702_v42 }
0x107c   :  { %vm652_vm9 = vmor %vm650_vm8, %vm651_vm7 }
0x107d   :  { %v647_v48 = vsub.f32 1.0, %v646_v47 }
0x107f   :  { %v648_v49 = vmul.f32 %v1702_v42, %v647_v48 }
0x1081   :  { %v649_v50 = vadd.f32 %v1702_v42, %v648_v49 }
0x1083   :  { %v653_v53 = vsel %vm652_vm9, %v1702_v42, %v649_v50 }
0x1084   :  { %v658_v55 = vsel %vm655_vm10, %v657_v54, %v653_v53 }
0x1085   :  { %v661_v61 = vmul.f32 %v658_v55, %v2047_v6 }
0x10e2   :  { %v664_v8 = vpop.permute.xlu1 %663 }
0x10e3   :  { %v666_v56 = vmul.f32 %v664_v8, %v658_v55 }
0x10e5   :  { %668 = vrot.lane.b32.xlu0 %v666_v56, %s1814_s2 }
0x10ea   :  { %v911_v58 = vpop.permute.xlu1 %910 }
0x10eb   :  { %v913_v59 = vadd.f32 %v911_v58, %v903_v57 }
0x10ed   :  { %1703 = vtanh.f32 %v913_v59 }
0x10f3   :  { %v1704_v60 = vpop.eup %1703 }
0x10f4   :  { %916 = vrot.lane.b32.xlu0 %v1704_v60, %s1813_s16 }
0x1157   :  { %v669_v62 = vpop.permute.xlu0 %668 }
0x1158   :  { %v671_v63 = vadd.f32 %v669_v62, %v661_v61 }
0x115a   :  { %1705 = vtanh.f32 %v671_v63 }
0x1160   :  { %v1706_v1 = vpop.eup %1705 }
0x1161   :  { %674 = vrot.lane.b32.xlu2 %v1706_v1, %s1813_s16 }
0x1166   :  { %v917_v2 = vpop.permute.xlu0 %916 }
0x1167   :  { %v2084_v3 = vmul.f32 %v917_v2, %v900_v38  ;;  %v757_v38 = vpop.f32.mrf.mxu0 }
0x1168   :  { %v758_v12 = vadd.f32 %v2025_v14, %v757_v38 }
0x1169   :  { %939 = vrot.lane.b32.xlu2 %v2084_v3, %s1814_s2 }
0x11bb   :  { %v675_v0 = vpop.permute.xlu2 %674 }
0x11bc   :  { %v677_v5 = vmul.f32 %v675_v0, %v658_v55 }
0x11be   :  { %679 = vrot.lane.b32.xlu1 %v677_v5, %s1814_s2  ;;  %v760_v5 = vpop.f32.mrf.mxu0 }
0x11c3   :  { %v940_v10 = vpop.permute.xlu2 %939 }
0x1230   :  { %v680_v7 = vpop.permute.xlu1 %679 }
0x1231   :  { %683 = vst.msk [vmem:[#allocation3 + $0x38] sm:$0xff] %vm141_vm4, %v680_v7  ;;  %v761_v7 = vadd.f32 %v2025_v14, %v760_v5 }
0x1238   :  { %v696_v6 = vld [vmem:[#allocation3 + $0x38] sm:$0xff] }
0x1239   :  { %1585 = vmatmul.msk.f32.gmra.mxu3 %vm141_vm4, %v696_v6 }
0x1241   :  { %1590 = vmatmul.msk.f32.vlgmr.msra.gmra.mxu3 %vm141_vm4, %v940_v10 }
0x12bc   :  { %v2096_v4 = vpop.f32.mrf.mxu3 }
0x12c4   :  { %v960_v18 = vpop.f32.mrf.mxu3 }
0x12c5   :  { %v963_v19 = vadd.f32 %v960_v18, %v755_v17 }
0x12c7   :  { %1707 = vtanh.f32 %v963_v19  ;;  %v1591_v21 = vmul.f32 -1.442695, %v963_v19 }
0x12c9   :  { %1709 = vpow2.f32 %v1591_v21 }
0x12cd   :  { %v1708_v20 = vpop.eup %1707 }
0x12ce   :  { %986 = vrot.lane.b32.xlu0 %v1708_v20, %s1813_s16 }
0x12cf   :  { %v1710_v22 = vpop.eup %1709 }
0x12d0   :  { %v967_v23 = vadd.f32 1.0, %v1710_v22 }
0x12d2   :  { %1711 = vrcp.f32 %v967_v23  ;;  %v979_v46 = vand.u32 2147483648, %v967_v23  ;;  %vm973_vm12 = vweird.f32 %v967_v23  ;;  %v977_v26 = vand.u32 2147483647, %v967_v23 }
0x12d4   :  { %v980_v28 = vor.u32 1.1754944e-38, %v979_v46  ;;  %vm978_vm14 = vcmp.eq.f32.partialorder %v977_v26, 8.507059e+37 }
0x12d8   :  { %v1712_v24 = vpop.eup %1711 }
0x12d9   :  { %v969_v43 = vmul.f32 %v1712_v24, %v967_v23  ;;  %vm974_vm11 = vweird.f32 %v1712_v24 }
0x12da   :  { %vm975_vm13 = vmor %vm973_vm12, %vm974_vm11 }
0x12db   :  { %v970_v44 = vsub.f32 1.0, %v969_v43 }
0x12dd   :  { %v971_v45 = vmul.f32 %v1712_v24, %v970_v44 }
0x12df   :  { %v972_v25 = vadd.f32 %v1712_v24, %v971_v45 }
0x12e1   :  { %v976_v27 = vsel %vm975_vm13, %v1712_v24, %v972_v25 }
0x12e2   :  { %v981_v30 = vsel %vm978_vm14, %v980_v28, %v976_v27 }
0x12e3   :  { %v984_v32 = vmul.f32 %v981_v30, %v913_v59 }
0x1340   :  { %v987_v29 = vpop.permute.xlu0 %986 }
0x1341   :  { %v989_v31 = vmul.f32 %v987_v29, %v981_v30 }
0x1343   :  { %991 = vrot.lane.b32.xlu1 %v989_v31, %s1814_s2 }
0x13b5   :  { %v992_v33 = vpop.permute.xlu1 %991 }
0x13b6   :  { %v994_v34 = vadd.f32 %v992_v33, %v984_v32 }
0x13b8   :  { %1713 = vtanh.f32 %v994_v34 }
0x13be   :  { %v1714_v35 = vpop.eup %1713 }
0x13bf   :  { %997 = vrot.lane.b32.xlu2 %v1714_v35, %s1813_s16  ;;  %v764_v35 = vadd.f32 %v2025_v14, %v2092_v15 }
0x1419   :  { %v998_v36 = vpop.permute.xlu2 %997 }
0x141a   :  { %v2102_v37 = vmul.f32 %v998_v36, %v981_v30 }
0x141c   :  { %1020 = vrot.lane.b32.xlu0 %v2102_v37, %s1814_s2 }
0x148e   :  { %v1021_v9 = vpop.permute.xlu0 %1020 }
0x148f   :  { %1592 = vmatmul.msk.f32.vlgmr.msra.gmra.mxu1 %vm141_vm4, %v1021_v9 }
0x150c   :  { %v1041_v39 = vpop.f32.mrf.mxu1 }
0x150d   :  { %v1044_v40 = vadd.f32 %v1041_v39, %v758_v12 }
0x150f   :  { %1715 = vtanh.f32 %v1044_v40  ;;  %v1593_v42 = vmul.f32 -1.442695, %v1044_v40 }
0x1511   :  { %1717 = vpow2.f32 %v1593_v42 }
0x1515   :  { %v1716_v41 = vpop.eup %1715 }
0x1516   :  { %1067 = vrot.lane.b32.xlu1 %v1716_v41, %s1813_s16 }
0x1517   :  { %v1718_v47 = vpop.eup %1717 }
0x1518   :  { %v1048_v48 = vadd.f32 1.0, %v1718_v47 }
0x151a   :  { %1719 = vrcp.f32 %v1048_v48  ;;  %v1060_v54 = vand.u32 2147483648, %v1048_v48  ;;  %vm1054_vm0 = vweird.f32 %v1048_v48  ;;  %v1058_v8 = vand.u32 2147483647, %v1048_v48 }
0x151c   :  { %v1061_v56 = vor.u32 1.1754944e-38, %v1060_v54  ;;  %vm1059_vm2 = vcmp.eq.f32.partialorder %v1058_v8, 8.507059e+37 }
0x1520   :  { %v1720_v49 = vpop.eup %1719 }
0x1521   :  { %v1050_v50 = vmul.f32 %v1720_v49, %v1048_v48  ;;  %vm1055_vm15 = vweird.f32 %v1720_v49 }
0x1522   :  { %vm1056_vm1 = vmor %vm1054_vm0, %vm1055_vm15 }
0x1523   :  { %v1051_v51 = vsub.f32 1.0, %v1050_v50 }
0x1525   :  { %v1052_v52 = vmul.f32 %v1720_v49, %v1051_v51 }
0x1527   :  { %v1053_v53 = vadd.f32 %v1720_v49, %v1052_v52 }
0x1529   :  { %v1057_v55 = vsel %vm1056_vm1, %v1720_v49, %v1053_v53 }
0x152a   :  { %v1062_v58 = vsel %vm1059_vm2, %v1061_v56, %v1057_v55 }
0x152b   :  { %v1065_v60 = vmul.f32 %v1062_v58, %v994_v34 }
0x1588   :  { %v1068_v57 = vpop.permute.xlu1 %1067 }
0x1589   :  { %v1070_v59 = vmul.f32 %v1068_v57, %v1062_v58 }
0x158b   :  { %1072 = vrot.lane.b32.xlu2 %v1070_v59, %s1814_s2 }
0x15e5   :  { %v1073_v61 = vpop.permute.xlu2 %1072 }
0x15e6   :  { %v1075_v62 = vadd.f32 %v1073_v61, %v1065_v60 }
0x15e8   :  { %1721 = vtanh.f32 %v1075_v62 }
0x15ee   :  { %v1722_v63 = vpop.eup %1721 }
0x15ef   :  { %1078 = vrot.lane.b32.xlu0 %v1722_v63, %s1813_s16 }
0x1661   :  { %v1079_v1 = vpop.permute.xlu0 %1078 }
0x1662   :  { %v2111_v2 = vmul.f32 %v1079_v1, %v1062_v58 }
0x1664   :  { %1101 = vrot.lane.b32.xlu1 %v2111_v2, %s1814_s2 }
0x16d6   :  { %v1102_v0 = vpop.permute.xlu1 %1101 }
0x16d7   :  { %1594 = vmatmul.msk.f32.vlgmr.msrb.gmra.mxu2 %vm141_vm4, %v1102_v0 }
0x175a   :  { %v1122_v6 = vpop.f32.mrf.mxu2 }
0x175b   :  { %v1125_v10 = vadd.f32 %v1122_v6, %v761_v7 }
0x175d   :  { %1723 = vtanh.f32 %v1125_v10  ;;  %v1595_v17 = vmul.f32 -1.442695, %v1125_v10 }
0x175f   :  { %1725 = vpow2.f32 %v1595_v17 }
0x1763   :  { %v1724_v11 = vpop.eup %1723 }
0x1764   :  { %1148 = vrot.lane.b32.xlu2 %v1724_v11, %s1813_s16 }
0x1765   :  { %v1726_v18 = vpop.eup %1725 }
0x1766   :  { %v1129_v19 = vadd.f32 1.0, %v1726_v18 }
0x1768   :  { %1727 = vrcp.f32 %v1129_v19  ;;  %v1141_v43 = vand.u32 2147483648, %v1129_v19  ;;  %vm1135_vm5 = vweird.f32 %v1129_v19  ;;  %v1139_v44 = vand.u32 2147483647, %v1129_v19 }
0x176a   :  { %v1142_v25 = vor.u32 1.1754944e-38, %v1141_v43  ;;  %vm1140_vm7 = vcmp.eq.f32.partialorder %v1139_v44, 8.507059e+37 }
0x176e   :  { %v1728_v20 = vpop.eup %1727 }
0x176f   :  { %v1131_v21 = vmul.f32 %v1728_v20, %v1129_v19  ;;  %vm1136_vm3 = vweird.f32 %v1728_v20 }
0x1770   :  { %vm1137_vm6 = vmor %vm1135_vm5, %vm1136_vm3 }
0x1771   :  { %v1132_v22 = vsub.f32 1.0, %v1131_v21 }
0x1773   :  { %v1133_v23 = vmul.f32 %v1728_v20, %v1132_v22 }
0x1775   :  { %v1134_v24 = vadd.f32 %v1728_v20, %v1133_v23 }
0x1777   :  { %v1138_v45 = vsel %vm1137_vm6, %v1728_v20, %v1134_v24 }
0x1778   :  { %v1143_v26 = vsel %vm1140_vm7, %v1142_v25, %v1138_v45 }
0x1779   :  { %v1146_v28 = vmul.f32 %v1143_v26, %v1075_v62  ;;  %v767_v62 = vadd.f32 %v2025_v14, %v2094_v16 }
0x17be   :  { %v1149_v46 = vpop.permute.xlu2 %1148 }
0x17bf   :  { %v1151_v27 = vmul.f32 %v1149_v46, %v1143_v26 }
0x17c1   :  { %1153 = vrot.lane.b32.xlu0 %v1151_v27, %s1814_s2 }
0x1833   :  { %v1154_v29 = vpop.permute.xlu0 %1153 }
0x1834   :  { %v1156_v30 = vadd.f32 %v1154_v29, %v1146_v28  ;;  %v2151_v29 = vld [vmem:[%s2293_s1] sm:$0xff] }
0x1835   :  { %vm839_vm0 = vcmp.gt.s32.totalorder %v2151_v29, 0  ;;  %vm1082_vm1 = vcmp.gt.s32.totalorder %v2151_v29, 3  ;;  %vm1163_vm2 = vcmp.gt.s32.totalorder %v2151_v29, 4  ;;  %vm920_vm3 = vcmp.gt.s32.totalorder %v2151_v29, 1 }
0x1836   :  { %1729 = vtanh.f32 %v1156_v30  ;;  %vm1244_vm5 = vcmp.gt.s32.totalorder %v2151_v29, 5 }
0x183c   :  { %v1730_v31 = vpop.eup %1729 }
0x183d   :  { %1159 = vrot.lane.b32.xlu1 %v1730_v31, %s1813_s16 }
0x18af   :  { %v1160_v32 = vpop.permute.xlu1 %1159 }
0x18b0   :  { %v2120_v33 = vmul.f32 %v1160_v32, %v1143_v26  ;;  %v1815_v26 = vmov 0  }
0x18b1   :  { %1620 = vset.pattern.permute.xlu1 %v1815_v26  ;;  %1621 = vset.pattern.permute.xlu2 %v1815_v26  ;;  %v1084_v31 = vsel %vm1082_vm1, 1, %v1815_v26  ;;  %v1165_v32 = vsel %vm1163_vm2, 1, %v1815_v26 }
0x18b2   :  { %1182 = vrot.lane.b32.xlu2 %v2120_v33, %s1814_s2  ;;  %1622 = vset.pattern.permute.xlu0 %v1815_v26 }
0x190c   :  { %v1183_v34 = vpop.permute.xlu2 %1182 }
0x190d   :  { %1596 = vmatmul.msk.f32.vlgmr.msrb.gmra.mxu3 %vm141_vm4, %v1183_v34 }
0x1990   :  { %v1203_v36 = vpop.f32.mrf.mxu3 }
0x1991   :  { %v1206_v9 = vadd.f32 %v1203_v36, %v764_v35  ;;  %v770_v35 = vadd.f32 %v2025_v14, %v2096_v4 }
0x1993   :  { %1731 = vtanh.f32 %v1206_v9  ;;  %v1597_v12 = vmul.f32 -1.442695, %v1206_v9 }
0x1995   :  { %1733 = vpow2.f32 %v1597_v12  ;;  %v922_v12 = vsel %vm920_vm3, 1, %v1815_v26 }
0x1999   :  { %v1732_v38 = vpop.eup %1731 }
0x199a   :  { %1229 = vrot.lane.b32.xlu0 %v1732_v38, %s1813_s16 }
0x199b   :  { %v1734_v39 = vpop.eup %1733 }
0x199c   :  { %v1210_v40 = vadd.f32 1.0, %v1734_v39  ;;  %v1424_v39 = vsel %vm920_vm3, %v2151_v29, 1  ;;  %vm1406_vm3 = vcmp.gt.s32.totalorder %v2151_v29, 7 }
0x199e   :  { %1735 = vrcp.f32 %v1210_v40  ;;  %v1222_v50 = vand.u32 2147483648, %v1210_v40  ;;  %vm1216_vm9 = vweird.f32 %v1210_v40  ;;  %v1220_v15 = vand.u32 2147483647, %v1210_v40 }
0x19a0   :  { %v1223_v52 = vor.u32 1.1754944e-38, %v1222_v50  ;;  %vm1221_vm11 = vcmp.eq.f32.partialorder %v1220_v15, 8.507059e+37 }
0x19a4   :  { %v1736_v41 = vpop.eup %1735 }
0x19a5   :  { %v1212_v42 = vmul.f32 %v1736_v41, %v1210_v40  ;;  %vm1217_vm8 = vweird.f32 %v1736_v41  ;;  %v1425_v40 = vcvt.s32.f32 %v1424_v39 }
0x19a6   :  { %vm1218_vm10 = vmor %vm1216_vm9, %vm1217_vm8 }
0x19a7   :  { %v1213_v47 = vsub.f32 1.0, %v1212_v42 }
0x19a9   :  { %v1214_v48 = vmul.f32 %v1736_v41, %v1213_v47 }
0x19ab   :  { %v1215_v49 = vadd.f32 %v1736_v41, %v1214_v48 }
0x19ad   :  { %v1219_v51 = vsel %vm1218_vm10, %v1736_v41, %v1215_v49  ;;  %v1246_v41 = vsel %vm1244_vm5, 1, %v1815_v26  ;;  %v1587_v49 = vadd.s32 4294967295, %v2151_v29 }
0x19ae   :  { %v1224_v54 = vsel %vm1221_vm11, %v1223_v52, %v1219_v51 }
0x19af   :  { %v1227_v55 = vmul.f32 %v1224_v54, %v1156_v30  ;;  %v842_v30 = vsel %vm839_vm0, 1, %v1815_v26  ;;  %vm921_vm6 = vcmp.eq.s32.totalorder %v1587_v49, 1  ;;  %vm1245_vm11 = vcmp.eq.s32.totalorder %v1587_v49, 5 }
0x19b0   :  { %v931_v15 = vsel %vm921_vm6, 1, %v1815_v26  ;;  %vm1325_vm0 = vcmp.gt.s32.totalorder %v2151_v29, 6  ;;  %vm1164_vm1 = vcmp.eq.s32.totalorder %v1587_v49, 4  ;;  %vm1326_vm2 = vcmp.eq.s32.totalorder %v1587_v49, 6 }
0x19b1   :  { %vm1407_vm5 = vcmp.eq.s32.totalorder %v1587_v49, 7 }
0x1a0c   :  { %v1230_v53 = vpop.permute.xlu0 %1229 }
0x1a0d   :  { %v1232_v8 = vmul.f32 %v1230_v53, %v1224_v54 }
0x1a0f   :  { %1234 = vrot.lane.b32.xlu1 %v1232_v8, %s1814_s2 }
0x1a81   :  { %v1235_v56 = vpop.permute.xlu1 %1234 }
0x1a82   :  { %v1237_v57 = vadd.f32 %v1235_v56, %v1227_v55 }
0x1a84   :  { %1737 = vtanh.f32 %v1237_v57 }
0x1a8a   :  { %v1738_v58 = vpop.eup %1737 }
0x1a8b   :  { %1240 = vrot.lane.b32.xlu2 %v1738_v58, %s1813_s16 }
0x1ae5   :  { %v1241_v59 = vpop.permute.xlu2 %1240 }
0x1ae6   :  { %v2130_v60 = vmul.f32 %v1241_v59, %v1224_v54  ;;  %v1255_v59 = vsel %vm1245_vm11, 1, %v1815_v26 }
0x1ae8   :  { %1263 = vrot.lane.b32.xlu0 %v2130_v60, %s1814_s2 }
0x1b5a   :  { %v1264_v61 = vpop.permute.xlu0 %1263 }
0x1b5b   :  { %1598 = vmatmul.msk.f32.vlgmr.msrb.gmra.mxu1 %vm141_vm4, %v1264_v61 }
0x1bd8   :  { %v1284_v63 = vpop.f32.mrf.mxu1 }
0x1bd9   :  { %v1287_v1 = vadd.f32 %v1284_v63, %v767_v62 }
0x1bdb   :  { %1739 = vtanh.f32 %v1287_v1  ;;  %v1599_v5 = vmul.f32 -1.442695, %v1287_v1 }
0x1bdd   :  { %1741 = vpow2.f32 %v1599_v5  ;;  %v1174_v5 = vsel %vm1164_vm1, 1, %v1815_v26 }
0x1be1   :  { %v1740_v0 = vpop.eup %1739 }
0x1be2   :  { %1310 = vrot.lane.b32.xlu1 %v1740_v0, %s1813_s16  ;;  %v1327_v0 = vsel %vm1325_vm0, 1, %v1815_v26 }
0x1be3   :  { %v1742_v7 = vpop.eup %1741 }
0x1be4   :  { %v1291_v6 = vadd.f32 1.0, %v1742_v7  ;;  %v1336_v7 = vsel %vm1326_vm2, 1, %v1815_v26 }
0x1be6   :  { %1743 = vrcp.f32 %v1291_v6  ;;  %v1303_v20 = vand.u32 2147483648, %v1291_v6  ;;  %vm1297_vm13 = vweird.f32 %v1291_v6  ;;  %v1301_v16 = vand.u32 2147483647, %v1291_v6 }
0x1be8   :  { %v1304_v22 = vor.u32 1.1754944e-38, %v1303_v20  ;;  %vm1302_vm15 = vcmp.eq.f32.partialorder %v1301_v16, 8.507059e+37 }
0x1bec   :  { %v1744_v10 = vpop.eup %1743 }
0x1bed   :  { %v1293_v11 = vmul.f32 %v1744_v10, %v1291_v6  ;;  %vm1298_vm12 = vweird.f32 %v1744_v10  ;;  %v1408_v6 = vsel %vm1406_vm3, 1, %v1815_v26 }
0x1bee   :  { %vm1299_vm14 = vmor %vm1297_vm13, %vm1298_vm12  ;;  %vm1002_vm12 = vcmp.eq.s32.totalorder %v1587_v49, 2  ;;  %vm1001_vm13 = vcmp.gt.s32.totalorder %v2151_v29, 2 }
0x1bef   :  { %v1294_v17 = vsub.f32 1.0, %v1293_v11  ;;  %v1012_v61 = vsel %vm1002_vm12, 1, %v1815_v26  ;;  %v1003_v62 = vsel %vm1001_vm13, 1, %v1815_v26 }
0x1bf1   :  { %v1295_v18 = vmul.f32 %v1744_v10, %v1294_v17 }
0x1bf3   :  { %v1296_v19 = vadd.f32 %v1744_v10, %v1295_v18 }
0x1bf5   :  { %v1300_v21 = vsel %vm1299_vm14, %v1744_v10, %v1296_v19  ;;  %vm1083_vm14 = vcmp.eq.s32.totalorder %v1587_v49, 3  ;;  %v1417_v19 = vsel %vm1407_vm5, 1, %v1815_v26 }
0x1bf6   :  { %v1305_v24 = vsel %vm1302_vm15, %v1304_v22, %v1300_v21  ;;  %v1093_v63 = vsel %vm1083_vm14, 1, %v1815_v26  ;;  %vm841_vm15 = vcmp.eq.s32.totalorder %v1587_v49, 0 }
0x1bf7   :  { %v1308_v44 = vmul.f32 %v1305_v24, %v1237_v57  ;;  %v850_v1 = vsel %vm841_vm15, 1, %v1815_v26 }
0x1c54   :  { %v1311_v23 = vpop.permute.xlu1 %1310 }
0x1c55   :  { %v1313_v43 = vmul.f32 %v1311_v23, %v1305_v24 }
0x1c57   :  { %1315 = vrot.lane.b32.xlu2 %v1313_v43, %s1814_s2 }
0x1cb1   :  { %v1316_v45 = vpop.permute.xlu2 %1315 }
0x1cb2   :  { %v2139_v25 = vadd.f32 %v1316_v45, %v1308_v44 }
0x1cb4   :  { %1745 = vtanh.f32 %v2139_v25 }
0x1cba   :  { %v1746_v46 = vpop.eup %1745 }
0x1cbb   :  { %1321 = vrot.lane.b32.xlu0 %v1746_v46, %s1813_s16 }
0x1d2d   :  { %v1322_v27 = vpop.permute.xlu0 %1321 }
0x1d2e   :  { %v2146_v28 = vmul.f32 %v1322_v27, %v1305_v24 }
0x1d30   :  { %1344 = vrot.lane.b32.xlu1 %v2146_v28, %s1814_s2 }
0x1d38   :  { %844 = vperm.xlu1 %1620, %v842_v30   ;;  %v1453_v30 = vld [vmem:[%s2298_s6 + $0x38] sm:$0xff] }
0x1d39   :  { %1475 = vmatpush.msra.mxu3 %v1453_v30  ;;  %v1455_v30 = vld [vmem:[%s2298_s6 + $0x48] sm:$0xff] }
0x1d40   :  { %1086 = vperm.xlu1 %1620, %v1084_v31   ;;  %v1452_v31 = vld [vmem:[%s2298_s6 + $0x30] sm:$0xff] }
0x1d41   :  { %1476 = vmatpush.msra.mxu3 %v1452_v31  ;;  %v1446_v31 = vld [vmem:[%s2298_s6] sm:$0xff] }
0x1d48   :  { %1167 = vperm.xlu1 %1620, %v1165_v32  }
0x1d50   :  { %933 = vperm.xlu1 %1620, %v931_v15  }
0x1d58   :  { %1257 = vperm.xlu1 %1620, %v1255_v59  }
0x1da2   :  { %v1345_v34 = vpop.permute.xlu1 %1344 }
0x1da3   :  { %1600 = vmatmul.msk.f32.vlgmr.msra.gmra.mxu2 %vm141_vm4, %v1345_v34  ;;  %v1451_v34 = vld [vmem:[%s2298_s6 + $0x28] sm:$0xff] }
0x1da4   :  { %1477 = vmatpush.msra.mxu3 %v1451_v34 }
0x1daa   :  { %v845_v16 = vpop.permute.xlu1 %844 }
0x1dab   :  { %vm846_vm6 = vcmp.eq.s32.totalorder %v845_v16, 1 }
0x1dac   :  { %v849_v23 = vsel %vm846_vm6, %v2051_v13, -inf  ;;  %v847_v39 = vsel %vm846_vm6, %v2051_v13, 0.0 }
0x1dad   :  { %v929_v43 = vmax.f32 %v849_v23, %v2084_v3 }
0x1db2   :  { %v1087_v24 = vpop.permute.xlu1 %1086 }
0x1dba   :  { %v1168_v27 = vpop.permute.xlu1 %1167 }
0x1e26   :  { %v1365_v36 = vpop.f32.mrf.mxu2 }
0x1e27   :  { %v1368_v9 = vadd.f32 %v1365_v36, %v770_v35 }
0x1e29   :  { %1747 = vtanh.f32 %v1368_v9  ;;  %v1601_v14 = vmul.f32 -1.442695, %v1368_v9 }
0x1e2b   :  { %1749 = vpow2.f32 %v1601_v14 }
0x1e2f   :  { %v1748_v38 = vpop.eup %1747 }
0x1e30   :  { %1391 = vrot.lane.b32.xlu2 %v1748_v38, %s1813_s16 }
0x1e31   :  { %v1750_v4 = vpop.eup %1749 }
0x1e32   :  { %v1372_v42 = vadd.f32 1.0, %v1750_v4 }
0x1e34   :  { %1751 = vrcp.f32 %v1372_v42  ;;  %v1384_v53 = vand.u32 2147483648, %v1372_v42  ;;  %vm1378_vm8 = vweird.f32 %v1372_v42  ;;  %v1382_v54 = vand.u32 2147483647, %v1372_v42 }
0x1e36   :  { %v1385_v55 = vor.u32 1.1754944e-38, %v1384_v53  ;;  %vm1383_vm10 = vcmp.eq.f32.partialorder %v1382_v54, 8.507059e+37 }
0x1e38   :  { %924 = vperm.xlu2 %1621, %v922_v12   ;;  %v1450_v12 = vld [vmem:[%s2298_s6 + $0x20] sm:$0xff] }
0x1e39   :  { %1478 = vmatpush.msra.mxu3 %v1450_v12 }
0x1e3a   :  { %v1752_v47 = vpop.eup %1751 }
0x1e3b   :  { %v1374_v48 = vmul.f32 %v1752_v47, %v1372_v42  ;;  %vm1379_vm7 = vweird.f32 %v1752_v47 }
0x1e3c   :  { %vm1380_vm9 = vmor %vm1378_vm8, %vm1379_vm7 }
0x1e3d   :  { %v1375_v50 = vsub.f32 1.0, %v1374_v48 }
0x1e3f   :  { %v1376_v51 = vmul.f32 %v1752_v47, %v1375_v50 }
0x1e40   :  { %1428 = vperm.xlu2 %1621, %v1425_v40  }
0x1e41   :  { %v1377_v52 = vadd.f32 %v1752_v47, %v1376_v51 }
0x1e43   :  { %v1381_v8 = vsel %vm1380_vm9, %v1752_v47, %v1377_v52  ;;  %vm1088_vm9 = vcmp.eq.s32.totalorder %v1087_v24, 1 }
0x1e44   :  { %v2172_v57 = vsel %vm1383_vm10, %v1385_v55, %v1381_v8  ;;  %vm1169_vm10 = vcmp.eq.s32.totalorder %v1168_v27, 1  ;;  %v1089_v49 = vsel %vm1088_vm9, %v2111_v2, 0.0 }
0x1e45   :  { %v1389_v10 = vmul.f32 %v2172_v57, %v2139_v25  ;;  %v1170_v8 = vsel %vm1169_vm10, %v2120_v33, 0.0 }
0x1e48   :  { %1248 = vperm.xlu2 %1621, %v1246_v41   ;;  %v934_v41 = vpop.permute.xlu1 %933 }
0x1e49   :  { %vm935_vm13 = vcmp.eq.s32.totalorder %v934_v41, 1 }
0x1e50   :  { %1014 = vperm.xlu2 %1621, %v1012_v61   ;;  %v1258_v53 = vpop.permute.xlu1 %1257 }
0x1e58   :  { %1095 = vperm.xlu2 %1621, %v1093_v63  }
0x1e60   :  { %1410 = vperm.xlu2 %1621, %v1408_v6  }
0x1e8a   :  { %v1392_v56 = vpop.permute.xlu2 %1391 }
0x1e8b   :  { %v1394_v58 = vmul.f32 %v1392_v56, %v2172_v57 }
0x1e8d   :  { %1396 = vrot.lane.b32.xlu0 %v1394_v58, %s1814_s2 }
0x1e92   :  { %v925_v20 = vpop.permute.xlu2 %924 }
0x1e93   :  { %vm926_vm7 = vcmp.eq.s32.totalorder %v925_v20, 1 }
0x1e94   :  { %v930_v44 = vsel %vm926_vm7, %v929_v43, %v849_v23  ;;  %v927_v35 = vsel %vm926_vm7, %v2084_v3, 0.0 }
0x1e95   :  { %1005 = vperm.xlu0 %1622, %v1003_v62   ;;  %v1010_v45 = vmax.f32 %v930_v44, %v2102_v37  ;;  %v928_v14 = vadd.f32 %v927_v35, %v847_v39  ;;  %v1626_v39 = vld [vmem:[%s2299_s7] ss:$0 sm:$0xff] }
0x1e9a   :  { %v2192_v21 = vpop.permute.xlu2 %1428 }
0x1e9b   :  { %vm1436_vm15 = vweird.f32 %v2192_v21  ;;  %v1442_v59 = vand.u32 2147483648, %v2192_v21 }
0x1e9d   :  { %852 = vperm.xlu0 %1622, %v850_v1  }
0x1ea2   :  { %v1249_v25 = vpop.permute.xlu2 %1248 }
0x1ea3   :  { %vm1250_vm12 = vcmp.eq.s32.totalorder %v1249_v25, 1 }
0x1ea4   :  { %v1251_v62 = vsel %vm1250_vm12, %v2130_v60, 0.0 }
0x1ea5   :  { %1329 = vperm.xlu0 %1622, %v1327_v0   ;;  %v1440_v0 = vand.u32 2147483647, %v2192_v21 }
0x1ea7   :  { %vm1441_vm7 = vcmp.eq.f32.partialorder %v1440_v0, 8.507059e+37 }
0x1eaa   :  { %v1015_v32 = vpop.permute.xlu2 %1014 }
0x1eab   :  { %vm1016_vm1 = vcmp.eq.s32.totalorder %v1015_v32, 1  ;;  %v1454_v32 = vld [vmem:[%s2298_s6 + $0x40] sm:$0xff] }
0x1ead   :  { %1176 = vperm.xlu0 %1622, %v1174_v5  }
0x1eb2   :  { %v1096_v51 = vpop.permute.xlu2 %1095 }
0x1eb3   :  { %vm1097_vm3 = vcmp.eq.s32.totalorder %v1096_v51, 1 }
0x1eb5   :  { %1338 = vperm.xlu0 %1622, %v1336_v7  }
0x1eba   :  { %v1411_v6 = vpop.permute.xlu2 %1410 }
0x1ebb   :  { %vm1412_vm6 = vcmp.eq.s32.totalorder %v1411_v6, 1 }
0x1eff   :  { %v1397_v11 = vpop.permute.xlu0 %1396 }
0x1f00   :  { %v1399_v17 = vadd.f32 %v1397_v11, %v1389_v10  ;;  %v1443_v11 = vor.u32 1.1754944e-38, %v1442_v59 }
0x1f02   :  { %1753 = vtanh.f32 %v1399_v17 }
0x1f03   :  { %1755 = vrcp.f32 %v2192_v21 }
0x1f07   :  { %v1006_v22 = vpop.permute.xlu0 %1005 }
0x1f08   :  { %v1754_v18 = vpop.eup %1753  ;;  %vm1007_vm8 = vcmp.eq.s32.totalorder %v1006_v22, 1 }
0x1f09   :  { %1402 = vrot.lane.b32.xlu1 %v1754_v18, %s1813_s16  ;;  %v1011_v26 = vsel %vm1007_vm8, %v1010_v45, %v930_v44  ;;  %v2214_v9 = vpop.eup %1755  ;;  %v1008_v40 = vsel %vm1007_vm8, %v2102_v37, 0.0  ;;  %vm1259_vm8 = vcmp.eq.s32.totalorder %v1258_v53, 1 }
0x1f0a   :  { %v1091_v29 = vmax.f32 %v1011_v26, %v2111_v2  ;;  %v1432_v42 = vmul.f32 %v2214_v9, %v2192_v21  ;;  %v1009_v47 = vadd.f32 %v1008_v40, %v928_v14  ;;  %vm1437_vm0 = vweird.f32 %v2214_v9 }
0x1f0b   :  { %vm2242_vm2 = vmor %vm1436_vm15, %vm1437_vm0 }
0x1f0c   :  { %v1092_v36 = vsel %vm1088_vm9, %v1091_v29, %v1011_v26  ;;  %v1433_v50 = vsub.f32 1.0, %v1432_v42  ;;  %v1090_v15 = vadd.f32 %v1089_v49, %v1009_v47  ;;  %v1447_v29 = vld [vmem:[%s2298_s6 + $0x8] sm:$0xff] }
0x1f0d   :  { %v1172_v4 = vmax.f32 %v1092_v36, %v2120_v33 }
0x1f0e   :  { %v1434_v55 = vmul.f32 %v2214_v9, %v1433_v50  ;;  %v1171_v58 = vadd.f32 %v1170_v8, %v1090_v15 }
0x1f0f   :  { %v853_v46 = vpop.permute.xlu0 %852  ;;  %v1173_v48 = vsel %vm1169_vm10, %v1172_v4, %v1092_v36 }
0x1f10   :  { %vm854_vm11 = vcmp.eq.s32.totalorder %v853_v46, 1  ;;  %v1253_v52 = vmax.f32 %v1173_v48, %v2130_v60  ;;  %v1252_v5 = vadd.f32 %v1251_v62, %v1171_v58 }
0x1f11   :  { %1419 = vperm.xlu1 %1620, %v1417_v19   ;;  %v855_v56 = vsel %vm854_vm11, %v2051_v13, 0.0  ;;  %v1435_v13 = vadd.f32 %v2214_v9, %v1434_v55  ;;  %vm1539_vm11 = vcmask 39936  }
0x1f12   :  { %v1254_v61 = vsel %vm1250_vm12, %v1253_v52, %v1173_v48  ;;  %v936_v63 = vsel %vm935_vm13, %v2084_v3, %v855_v56 }
0x1f13   :  { %v1334_v7 = vmax.f32 %v1254_v61, %v2146_v28  ;;  %v1017_v3 = vsel %vm1016_vm1, %v2102_v37, %v936_v63  ;;  %v1439_v16 = vsel %vm2242_vm2, %v2214_v9, %v1435_v13 }
0x1f14   :  { %v1098_v24 = vsel %vm1097_vm3, %v2111_v2, %v1017_v3  ;;  %v1444_v45 = vsel %vm1441_vm7, %v1443_v11, %v1439_v16  ;;  %v1449_v2 = vld [vmem:[%s2298_s6 + $0x18] sm:$0xff] }
0x1f15   :  { %1500 = vmatpush.msra.mxu1 %v1449_v2 }
0x1f17   :  { %v1330_v38 = vpop.permute.xlu0 %1329 }
0x1f18   :  { %vm1331_vm14 = vcmp.eq.s32.totalorder %v1330_v38, 1 }
0x1f19   :  { %v1332_v1 = vsel %vm1331_vm14, %v2146_v28, 0.0  ;;  %v1335_v19 = vsel %vm1331_vm14, %v1334_v7, %v1254_v61 }
0x1f1a   :  { %v1333_v18 = vadd.f32 %v1332_v1, %v1252_v5 }
0x1f1f   :  { %v1177_v54 = vpop.permute.xlu0 %1176 }
0x1f20   :  { %vm1178_vm5 = vcmp.eq.s32.totalorder %v1177_v54, 1 }
0x1f21   :  { %v1179_v37 = vsel %vm1178_vm5, %v2120_v33, %v1098_v24  ;;  %v1448_v33 = vld [vmem:[%s2298_s6 + $0x10] sm:$0xff] }
0x1f22   :  { %v1260_v25 = vsel %vm1259_vm8, %v2130_v60, %v1179_v37  ;;  %v1457_v60 = vld [vmem:[%s2298_s6 + $0x58] sm:$0xff]  ;;  %1501 = vmatpush.msra.mxu1 %v1448_v33 }
0x1f23   :  { %1525 = vmatpush.msrb.mxu2 %v1457_v60 }
0x1f24   :  { %1502 = vmatpush.msra.mxu1 %v1447_v29 }
0x1f26   :  { %1503 = vmatpush.msra.mxu1 %v1446_v31 }
0x1f27   :  { %v1339_v21 = vpop.permute.xlu0 %1338 }
0x1f28   :  { %vm1340_vm9 = vcmp.eq.s32.totalorder %v1339_v21, 1 }
0x1f29   :  { %v1341_v26 = vsel %vm1340_vm9, %v2146_v28, %v1260_v25  ;;  %v1456_v28 = vld [vmem:[%s2298_s6 + $0x50] sm:$0xff]  ;;  %s1546_s6 = sshll.u32 %s1816_s3, 4  ;;  %s1547_s6 = int_to_ptr.vmem [resolvable:$true] %s1546_s6 }
0x1f2a   :  { %1526 = vmatpush.msrb.mxu2 %v1456_v28 }
0x1f2c   :  { %1527 = vmatpush.msrb.mxu2 %v1455_v30 }
0x1f2e   :  { %1528 = vmatpush.msrb.mxu2 %v1454_v32 }
0x1f7b   :  { %v1403_v17 = vpop.permute.xlu1 %1402 }
0x1f7c   :  { %v1405_v20 = vmul.f32 %v1403_v17, %v2172_v57 }
0x1f7e   :  { %v1413_v22 = vsel %vm1412_vm6, %v1405_v20, 0.0  ;;  %v1415_v23 = vmax.f32 %v1335_v19, %v1405_v20 }
0x1f7f   :  { %v1414_v43 = vadd.f32 %v1413_v22, %v1333_v18 }
0x1f80   :  { %v1416_v44 = vsel %vm1412_vm6, %v1415_v23, %v1335_v19 }
0x1f81   :  { %1459 = vrot.lane.b32.xlu2 %v1416_v44, %s1814_s2  ;;  %v1445_v57 = vmul.f32 %v1444_v45, %v1414_v43 }
0x1f83   :  { %1484 = vrot.lane.b32.xlu1 %v1445_v57, %s1814_s2  ;;  %v1420_v46 = vpop.permute.xlu1 %1419 }
0x1f84   :  { %vm1421_vm10 = vcmp.eq.s32.totalorder %v1420_v46, 1 }
0x1f85   :  { %v1422_v27 = vsel %vm1421_vm10, %v1405_v20, %v1341_v26 }
0x1f86   :  { %1509 = vrot.lane.b32.xlu0 %v1422_v27, %s1814_s2 }
0x1fdb   :  { %v1460_v34 = vpop.permute.xlu2 %1459 }
0x1fdc   :  { %1602 = vmatmul.msk.f32.vlgmr.msra.gmra.mxu3 %vm141_vm4, %v1460_v34 }
0x1ff5   :  { %v1485_v35 = vpop.permute.xlu1 %1484 }
0x1ff6   :  { %1603 = vmatmul.msk.f32.vlgmr.msra.gmra.mxu1 %vm141_vm4, %v1485_v35 }
0x1ff8   :  { %v1510_v36 = vpop.permute.xlu0 %1509 }
0x1ff9   :  { %1604 = vmatmul.msk.f32.vlgmr.msrb.gmra.mxu2 %vm141_vm4, %v1510_v36 }
0x205f   :  { %v1480_v38 = vpop.f32.mrf.mxu3 }
0x2073   :  { %v1505_v9 = vpop.f32.mrf.mxu1 }
0x2074   :  { %v1506_v12 = vadd.f32 %v1505_v9, %v1480_v38 }
0x207c   :  { %v1530_v40 = vpop.f32.mrf.mxu2 }
0x207d   :  { %v1533_v41 = vadd.f32 %v1530_v40, %v1506_v12 }
0x207f   :  { %v1538_v14 = vadd.f32 %v1626_v39, %v1533_v41 }
0x2081   :  { %1540 = vst.msk [vmem:[#allocation7] sm:$0xff] %vm1539_vm11, %v1538_v14 }
0x2082   :  { %1551 = dma.vmem_to_hbm [thread:$0]  %s1547_s6, 128, %s1549_s27, [#allocation6]  }
0x2083   :  { %1807 = dma.done.wait [#allocation6], 128  }
0x2084   :  { %1808 = vsyncadd [#allocation6], 4294967168 }
0x2085   :  { %1556 = vsyncpa [#allocation5], 1 }
0x2086   :  { %1557 = vsyncpa [#allocation6], 1 }

</bundles_post_ra>
